<compile_context>
chip_gen: v5e
topology: v5e:2x2
jax: 0.10.0
libtpu: 0.0.40
codegen_flags: <defaults>
</compile_context>

<pallas_src>
import functools

import jax
import jax.numpy as jnp
from jax.experimental import pallas as pl
from jax.experimental.pallas import tpu as pltpu


# ----------------------------------------------------------------------------
# helpers
# ----------------------------------------------------------------------------
def _round_up(x, m):
    return ((x + m - 1) // m) * m


def _pick_tile(m, want):
    """Row tile: multiple of 8, <= want, and >= 2 grid blocks when possible so
    both v7x TensorCores get work under dimension_semantics=('parallel',)."""
    m8 = _round_up(max(m, 1), 8)
    t = _round_up(max(8, min(want, m8)), 8)
    if m8 >= 16 and pl.cdiv(m8, t) < 2:
        t = _round_up(m8 // 2, 8)
    return t


def _vmem_capacity_bytes():
    """Per-core VMEM capacity (falls back to the smallest current part)."""
    try:
        info = pltpu.get_tpu_info()
        return int(getattr(info, "vmem_capacity_bytes", 64 * 1024 * 1024))
    except Exception:
        return 64 * 1024 * 1024


# ----------------------------------------------------------------------------
# Fused kernel: SA shared MLP (3 matmuls + folded BN + ReLU) -> nsample maxpool
#               -> proposal head (3 matmuls + folded BN + ReLU).
# All weights stay resident in VMEM; activations never touch HBM between stages.
# ----------------------------------------------------------------------------
def _fused_kernel(S, gf_ref, w1_ref, b1_ref, w2_ref, b2_ref, w3_ref, b3_ref,
                  hw1_ref, hb1_ref, hw2_ref, hb2_ref, hw3_ref, hb3_ref,
                  pooled_ref, net_ref):
    rows = gf_ref.shape[0]            # tile * nsample
    tm = rows // S

    # ---- PointnetSAModuleVotes shared MLP (xyz folded into the K dim) -------
    h = jnp.dot(gf_ref[...], w1_ref[...], preferred_element_type=jnp.float32)
    h = jnp.maximum(h + b1_ref[...], 0.0)
    h = jnp.dot(h.astype(jnp.bfloat16), w2_ref[...],
                preferred_element_type=jnp.float32)
    h = jnp.maximum(h + b2_ref[...], 0.0)
    h = jnp.dot(h.astype(jnp.bfloat16), w3_ref[...],
                preferred_element_type=jnp.float32)
    h = jnp.maximum(h + b3_ref[...], 0.0)

    # ---- max-pool over the nsample axis, fused (no HBM round trip) ----------
    pooled = jnp.max(h.reshape(tm, S, h.shape[-1]), axis=1)      # (tm, 128) f32
    pooled_ref[...] = pooled

    # ---- proposal head on the resident pooled tile ---------------------------
    g = jnp.dot(pooled.astype(jnp.bfloat16), hw1_ref[...],
                preferred_element_type=jnp.float32)
    g = jnp.maximum(g + hb1_ref[...], 0.0)
    g = jnp.dot(g.astype(jnp.bfloat16), hw2_ref[...],
                preferred_element_type=jnp.float32)
    g = jnp.maximum(g + hb2_ref[...], 0.0)
    net_ref[...] = jnp.dot(g.astype(jnp.bfloat16), hw3_ref[...],
                           preferred_element_type=jnp.float32) + hb3_ref[...]


# ----------------------------------------------------------------------------
# Module
# ----------------------------------------------------------------------------
class ProposalModulePallas:

    def __init__(self, num_class, num_heading_bin, num_size_cluster,
                 mean_size_arr, num_proposal, sampling, seed_feat_dim=256,
                 nsample=16, radius=0.3, key=None):
        self.num_class = num_class
        self.num_heading_bin = num_heading_bin   # kept for parity (unused, as in reference)
        self.angle_bin = 6
        self.num_size_cluster = num_size_cluster
        self.num_proposal = num_proposal
        self.sampling = sampling
        self.seed_feat_dim = seed_feat_dim
        self.nsample = nsample
        self.radius = radius

        ns = num_size_cluster
        self.out_ch = 2 + 3 + self.angle_bin + ns * 4 + num_class
        self.out_pad = _round_up(self.out_ch, 128)      # lane-dense head output
        self.in_ch = 3 + seed_feat_dim                  # [xyz_rel | features]
        self.in_pad = _round_up(self.in_ch, 8)          # keep contraction aligned
        self.mean_size = jnp.asarray(mean_size_arr, jnp.float32).reshape(ns, 3)

        # generation-aware tiling: v5e/v6e have 128 MiB VMEM, v7x 64 MiB per TC.
        vmem_cap = _vmem_capacity_bytes()
        if vmem_cap >= 96 * 1024 * 1024:
            self.row_tile, self.vmem_limit = 512, 64 * 1024 * 1024
        else:
            self.row_tile, self.vmem_limit = 256, 32 * 1024 * 1024

        if key is None:
            key = jax.random.PRNGKey(0)
        keys = jax.random.split(key, 12)

        def _w(k, cin, cout):
            return jax.random.normal(k, (cin, cout), jnp.float32) / jnp.sqrt(float(cin))

        def _bn(k, c):  # eval-mode BatchNorm folded into per-channel scale/shift
            k1, k2, k3, k4 = jax.random.split(k, 4)
            gamma = 1.0 + 0.1 * jax.random.normal(k1, (c,), jnp.float32)
            beta = 0.1 * jax.random.normal(k2, (c,), jnp.float32)
            rmean = 0.1 * jax.random.normal(k3, (c,), jnp.float32)
            rvar = 1.0 + 0.1 * jnp.abs(jax.random.normal(k4, (c,), jnp.float32))
            scale = gamma * jax.lax.rsqrt(rvar + 1e-5)
            return scale, beta - rmean * scale

        # ---- SA shared MLP: [3 + seed_feat_dim, 128, 128, 128] + BN + ReLU ----
        w1 = _w(keys[0], self.in_ch, 128)
        s1, sh1 = _bn(keys[3], 128)
        w1 = (w1 * s1[None, :]).astype(jnp.bfloat16)
        self.sa_w1 = (jnp.zeros((self.in_pad, 128), jnp.bfloat16)
                      .at[:self.in_ch].set(w1))          # zero rows for lane pad
        self.sa_b1 = sh1.reshape(1, 128)

        w2 = _w(keys[1], 128, 128)
        s2, sh2 = _bn(keys[4], 128)
        self.sa_w2 = (w2 * s2[None, :]).astype(jnp.bfloat16)
        self.sa_b2 = sh2.reshape(1, 128)

        w3 = _w(keys[2], 128, 128)
        s3, sh3 = _bn(keys[5], 128)
        self.sa_w3 = (w3 * s3[None, :]).astype(jnp.bfloat16)
        self.sa_b3 = sh3.reshape(1, 128)

        # ---- proposal head: Conv1d(128,128,1,noBias)+BN+ReLU x2, Conv1d(128,out)
        pw1 = _w(keys[6], 128, 128)
        ps1, pb1 = _bn(keys[7], 128)
        self.h_w1 = (pw1 * ps1[None, :]).astype(jnp.bfloat16)
        self.h_b1 = pb1.reshape(1, 128)

        pw2 = _w(keys[8], 128, 128)
        ps2, pb2 = _bn(keys[9], 128)
        self.h_w2 = (pw2 * ps2[None, :]).astype(jnp.bfloat16)
        self.h_b2 = pb2.reshape(1, 128)

        pw3 = _w(keys[10], 128, self.out_ch)
        pb3 = 0.1 * jax.random.normal(keys[11], (self.out_ch,), jnp.float32)
        self.h_w3 = (jnp.zeros((128, self.out_pad), jnp.bfloat16)
                     .at[:, :self.out_ch].set(pw3.astype(jnp.bfloat16)))
        self.h_b3 = (jnp.zeros((1, self.out_pad), jnp.float32)
                     .at[0, :self.out_ch].set(pb3))

    # ---------------- tile selection (VMEM-budget aware) -----------------------
    def _row_tile_for(self, M):
        lane_pad = _round_up(self.in_pad, 128)
        per_row = self.nsample * lane_pad * 2 * 2        # bf16, double-buffered
        budget = max(8, (int(self.vmem_limit * 0.4) // per_row) // 8 * 8)
        return _pick_tile(M, min(self.row_tile, budget))

    # ---------------- fused SA MLP + maxpool + proposal head -------------------
    def _fused(self, gf, M):
        S = self.nsample
        tile = self._row_tile_for(M)
        grid = (pl.cdiv(M, tile),)
        const = lambda i: (0, 0)
        return pl.pallas_call(
            functools.partial(_fused_kernel, S),
            out_shape=(jax.ShapeDtypeStruct((M, 128), jnp.float32),
                       jax.ShapeDtypeStruct((M, self.out_pad), jnp.float32)),
            grid=grid,
            in_specs=[
                pl.BlockSpec((tile * S, self.in_pad), lambda i: (i, 0)),
                pl.BlockSpec((self.in_pad, 128), const),
                pl.BlockSpec((1, 128), const),
                pl.BlockSpec((128, 128), const),
                pl.BlockSpec((1, 128), const),
                pl.BlockSpec((128, 128), const),
                pl.BlockSpec((1, 128), const),
                pl.BlockSpec((128, 128), const),
                pl.BlockSpec((1, 128), const),
                pl.BlockSpec((128, 128), const),
                pl.BlockSpec((1, 128), const),
                pl.BlockSpec((128, self.out_pad), const),
                pl.BlockSpec((1, self.out_pad), const),
            ],
            out_specs=(pl.BlockSpec((tile, 128), lambda i: (i, 0)),
                       pl.BlockSpec((tile, self.out_pad), lambda i: (i, 0))),
            compiler_params=pltpu.CompilerParams(
                dimension_semantics=("parallel",),
                vmem_limit_bytes=self.vmem_limit),
        )(gf, self.sa_w1, self.sa_b1, self.sa_w2, self.sa_b2,
          self.sa_w3, self.sa_b3, self.h_w1, self.h_b1,
          self.h_w2, self.h_b2, self.h_w3, self.h_b3)

    # ---------------- forward ---------------------------------------------------
    def __call__(self, xyz, features, data_dict):
        B, K, _ = xyz.shape
        P, S = self.num_proposal, self.nsample
        M = B * P

        # vote aggregation: sampling + grouping run in XLA.
        # TODO(synk): furthest-point-sampling + ball-query (CUDA ops inside
        # PointnetSAModuleVotes) stand in as strided sampling + top_k kNN.
        stride = max(K // P, 1)
        inds = jnp.broadcast_to(jnp.arange(P, dtype=jnp.int32) * stride, (B, P))
        b_idx = jnp.arange(B)
        new_xyz = xyz[b_idx[:, None], inds]                               # (B,P,3)

        d2 = jnp.sum((new_xyz[:, :, None, :] - xyz[:, None, :, :]) ** 2, axis=-1)
        _, nn_idx = jax.lax.top_k(-d2, S)                                 # (B,P,S)

        # xyz recentered / scaled in f32 (no bf16 cancellation), then cast and
        # folded into the bf16 feature slab so the kernel sees one lane-dense
        # (M*S, in_pad) stream and one MXU contraction (no 3-lane block,
        # no per-row lane splats).
        g_xyz = xyz[b_idx[:, None, None], nn_idx]                         # (B,P,S,3)
        xyz_rel = ((g_xyz - new_xyz[:, :, None, :]) * (1.0 / self.radius)
                   ).astype(jnp.bfloat16)
        feat_t = jnp.transpose(features, (0, 2, 1)).astype(jnp.bfloat16)  # (B,K,C)
        g_feat = feat_t[b_idx[:, None, None], nn_idx]                     # (B,P,S,C)
        parts = [xyz_rel, g_feat]
        if self.in_pad > self.in_ch:
            parts.append(jnp.zeros((B, P, S, self.in_pad - self.in_ch),
                                   jnp.bfloat16))
        gf = jnp.concatenate(parts, axis=-1).reshape(M * S, self.in_pad)
        # TODO(synk): this gather is still materialized by XLA; moving it
        # in-kernel (scalar-prefetched nn_idx with features kept in HBM) is the
        # remaining HBM-bandwidth lever, but needs a data-dependent gather that
        # BlockSpec cannot express cleanly.

        pooled, net_pad = self._fused(gf, M)

        data_dict['aggregated_vote_xyz'] = new_xyz
        data_dict['aggregated_vote_features'] = pooled.reshape(B, P, 128)
        data_dict['aggregated_vote_inds'] = inds
        return self._decode(net_pad, new_xyz, data_dict, B, P)

    # ---------------- box decode (plain JAX on the head output) ----------------
    # Done in XLA: net is read here anyway; an in-kernel version is lane-sparse
    # XLU slice/concat work plus an extra HBM write with zero read savings.
    def _decode(self, net_pad, base_xyz, data_dict, B, P):
        ns = self.num_size_cluster
        net = net_pad[:, :self.out_ch].reshape(B, P, self.out_ch)

        data_dict['objectness_scores'] = net[..., 0:2]
        data_dict['center'] = base_xyz + net[..., 2:5]

        # ortho_6d_2_Mat: y = norm(y_raw); z = norm(cross(x_raw, y)); x = cross(y, z)
        x_raw = net[..., 5:8].reshape(-1, 3)
        y_raw = net[..., 8:11].reshape(-1, 3)
        y = y_raw / (jnp.linalg.norm(y_raw, axis=1, keepdims=True) + 1e-8)
        z = jnp.cross(x_raw, y)
        z = z / (jnp.linalg.norm(z, axis=1, keepdims=True) + 1e-8)
        x = jnp.cross(y, z)
        data_dict['rot_mat'] = jnp.stack([x, y, z], axis=2).reshape(B, P, 3, 3)

        data_dict['size_scores'] = net[..., 11:11 + ns]
        srn = net[..., 11 + ns:11 + 4 * ns].reshape(B, P, ns, 3)
        mean = self.mean_size[None, None]                                 # (1,1,ns,3)
        data_dict['size_residuals_normalized'] = srn
        data_dict['size_residuals'] = srn * mean
        data_dict['size_calc'] = (srn + 1.0) * mean
        data_dict['sem_cls_scores'] = net[..., 11 + 4 * ns:]
        return data_dict


# ----------------------------------------------------------------------------
if __name__ == "__main__":
    B, K = 2, 64
    seed_feat_dim = 32
    num_class = 4
    num_heading_bin = 12
    num_size_cluster = 4
    num_proposal = 16

    key = jax.random.PRNGKey(0)
    k_xyz, k_feat, k_param = jax.random.split(key, 3)

    mean_size_arr = (jnp.arange(num_size_cluster * 3, dtype=jnp.float32)
                     .reshape(num_size_cluster, 3) * 0.1 + 0.5)

    module = ProposalModulePallas(num_class, num_heading_bin, num_size_cluster,
                                  mean_size_arr, num_proposal,
                                  sampling="vote_fps",
                                  seed_feat_dim=seed_feat_dim,
                                  key=k_param)

    xyz = jax.random.uniform(k_xyz, (B, K, 3), jnp.float32)
    features = jax.random.normal(k_feat, (B, seed_feat_dim, K), jnp.float32)

    data_dict = module(xyz, features, {})
    jax.block_until_ready(data_dict)
    print("KERNEL_OK")
</pallas_src>

<mosaic_0001>
module attributes {stable_mosaic.version = 11 : i64} {
  func.func @_fused_kernel(%arg0: i32, %arg1: memref<256x40xbf16, #tpu.memory_space<vmem>>, %arg2: memref<40x128xbf16, #tpu.memory_space<vmem>>, %arg3: memref<1x128xf32, #tpu.memory_space<vmem>>, %arg4: memref<128x128xbf16, #tpu.memory_space<vmem>>, %arg5: memref<1x128xf32, #tpu.memory_space<vmem>>, %arg6: memref<128x128xbf16, #tpu.memory_space<vmem>>, %arg7: memref<1x128xf32, #tpu.memory_space<vmem>>, %arg8: memref<128x128xbf16, #tpu.memory_space<vmem>>, %arg9: memref<1x128xf32, #tpu.memory_space<vmem>>, %arg10: memref<128x128xbf16, #tpu.memory_space<vmem>>, %arg11: memref<1x128xf32, #tpu.memory_space<vmem>>, %arg12: memref<128x128xbf16, #tpu.memory_space<vmem>>, %arg13: memref<1x128xf32, #tpu.memory_space<vmem>>, %arg14: memref<16x128xf32, #tpu.memory_space<vmem>>, %arg15: memref<16x128xf32, #tpu.memory_space<vmem>>) attributes {dimension_semantics = [#tpu.dimension_semantics<parallel>], iteration_bounds = array<i64: 2>, scalar_prefetch = 0 : i64, scratch_operands = 0 : i64, tpu.core_type = #tpu.core_type<tc>, window_params = [{transform_indices = @transform_0, window_bounds = array<i64: 256, 40>}, {pipeline_mode = #tpu.pipeline_mode<synchronous>, transform_indices = @transform_1, window_bounds = array<i64: 40, 128>}, {pipeline_mode = #tpu.pipeline_mode<synchronous>, transform_indices = @transform_2, window_bounds = array<i64: 1, 128>}, {pipeline_mode = #tpu.pipeline_mode<synchronous>, transform_indices = @transform_3, window_bounds = array<i64: 128, 128>}, {pipeline_mode = #tpu.pipeline_mode<synchronous>, transform_indices = @transform_4, window_bounds = array<i64: 1, 128>}, {pipeline_mode = #tpu.pipeline_mode<synchronous>, transform_indices = @transform_5, window_bounds = array<i64: 128, 128>}, {pipeline_mode = #tpu.pipeline_mode<synchronous>, transform_indices = @transform_6, window_bounds = array<i64: 1, 128>}, {pipeline_mode = #tpu.pipeline_mode<synchronous>, transform_indices = @transform_7, window_bounds = array<i64: 128, 128>}, {pipeline_mode = #tpu.pipeline_mode<synchronous>, transform_indices = @transform_8, window_bounds = array<i64: 1, 128>}, {pipeline_mode = #tpu.pipeline_mode<synchronous>, transform_indices = @transform_9, window_bounds = array<i64: 128, 128>}, {pipeline_mode = #tpu.pipeline_mode<synchronous>, transform_indices = @transform_10, window_bounds = array<i64: 1, 128>}, {pipeline_mode = #tpu.pipeline_mode<synchronous>, transform_indices = @transform_11, window_bounds = array<i64: 128, 128>}, {pipeline_mode = #tpu.pipeline_mode<synchronous>, transform_indices = @transform_12, window_bounds = array<i64: 1, 128>}, {transform_indices = @transform_13, window_bounds = array<i64: 16, 128>}, {transform_indices = @transform_14, window_bounds = array<i64: 16, 128>}]} {
    %c0 = arith.constant 0 : index
    %c0_0 = arith.constant 0 : index
    %0 = vector.load %arg1[%c0, %c0_0] : memref<256x40xbf16, #tpu.memory_space<vmem>>, vector<256x40xbf16>
    %c0_1 = arith.constant 0 : index
    %c0_2 = arith.constant 0 : index
    %1 = vector.load %arg2[%c0_1, %c0_2] : memref<40x128xbf16, #tpu.memory_space<vmem>>, vector<40x128xbf16>
    %cst = arith.constant dense<0.000000e+00> : vector<256x128xf32>
    %2 = tpu.matmul %0, %1, %cst {dimension_numbers = #tpu.dot_dimension_numbers<[1], [0], [0], [1], [0, 0, 1, 1], [], []>} : vector<256x40xbf16>, vector<40x128xbf16>, vector<256x128xf32> -> vector<256x128xf32>
    %c0_3 = arith.constant 0 : index
    %c0_4 = arith.constant 0 : index
    %3 = vector.load %arg3[%c0_3, %c0_4] : memref<1x128xf32, #tpu.memory_space<vmem>>, vector<1x128xf32>
    %4 = vector.broadcast %3 : vector<1x128xf32> to vector<256x128xf32>
    %5 = arith.addf %2, %4 : vector<256x128xf32>
    %cst_5 = arith.constant 0.000000e+00 : f32
    %6 = vector.broadcast %cst_5 : f32 to vector<256x128xf32>
    %7 = arith.maximumf %5, %6 : vector<256x128xf32>
    %8 = arith.truncf %7 : vector<256x128xf32> to vector<256x128xbf16>
    %c0_6 = arith.constant 0 : index
    %c0_7 = arith.constant 0 : index
    %9 = vector.load %arg4[%c0_6, %c0_7] : memref<128x128xbf16, #tpu.memory_space<vmem>>, vector<128x128xbf16>
    %cst_8 = arith.constant dense<0.000000e+00> : vector<256x128xf32>
    %10 = tpu.matmul %8, %9, %cst_8 {dimension_numbers = #tpu.dot_dimension_numbers<[1], [0], [0], [1], [0, 0, 1, 1], [], []>} : vector<256x128xbf16>, vector<128x128xbf16>, vector<256x128xf32> -> vector<256x128xf32>
    %c0_9 = arith.constant 0 : index
    %c0_10 = arith.constant 0 : index
    %11 = vector.load %arg5[%c0_9, %c0_10] : memref<1x128xf32, #tpu.memory_space<vmem>>, vector<1x128xf32>
    %12 = vector.broadcast %11 : vector<1x128xf32> to vector<256x128xf32>
    %13 = arith.addf %10, %12 : vector<256x128xf32>
    %cst_11 = arith.constant 0.000000e+00 : f32
    %14 = vector.broadcast %cst_11 : f32 to vector<256x128xf32>
    %15 = arith.maximumf %13, %14 : vector<256x128xf32>
    %16 = arith.truncf %15 : vector<256x128xf32> to vector<256x128xbf16>
    %c0_12 = arith.constant 0 : index
    %c0_13 = arith.constant 0 : index
    %17 = vector.load %arg6[%c0_12, %c0_13] : memref<128x128xbf16, #tpu.memory_space<vmem>>, vector<128x128xbf16>
    %cst_14 = arith.constant dense<0.000000e+00> : vector<256x128xf32>
    %18 = tpu.matmul %16, %17, %cst_14 {dimension_numbers = #tpu.dot_dimension_numbers<[1], [0], [0], [1], [0, 0, 1, 1], [], []>} : vector<256x128xbf16>, vector<128x128xbf16>, vector<256x128xf32> -> vector<256x128xf32>
    %c0_15 = arith.constant 0 : index
    %c0_16 = arith.constant 0 : index
    %19 = vector.load %arg7[%c0_15, %c0_16] : memref<1x128xf32, #tpu.memory_space<vmem>>, vector<1x128xf32>
    %20 = vector.broadcast %19 : vector<1x128xf32> to vector<256x128xf32>
    %21 = arith.addf %18, %20 : vector<256x128xf32>
    %cst_17 = arith.constant 0.000000e+00 : f32
    %22 = vector.broadcast %cst_17 : f32 to vector<256x128xf32>
    %23 = arith.maximumf %21, %22 : vector<256x128xf32>
    %24 = vector.shape_cast %23 : vector<256x128xf32> to vector<16x16x128xf32>
    %cst_18 = arith.constant dense<0xFF800000> : vector<16x128xf32>
    %25 = vector.multi_reduction <maximumf>, %24, %cst_18 [1] : vector<16x16x128xf32> to vector<16x128xf32>
    %c0_19 = arith.constant 0 : index
    %c0_20 = arith.constant 0 : index
    %26 = vector.load %arg14[%c0_19, %c0_20] : memref<16x128xf32, #tpu.memory_space<vmem>>, vector<16x128xf32>
    tpu.vector_store %arg14[%c0_19, %c0_20], %25 {strides = array<i32>} : memref<16x128xf32, #tpu.memory_space<vmem>>, vector<16x128xf32>,
    %27 = arith.truncf %25 : vector<16x128xf32> to vector<16x128xbf16>
    %c0_21 = arith.constant 0 : index
    %c0_22 = arith.constant 0 : index
    %28 = vector.load %arg8[%c0_21, %c0_22] : memref<128x128xbf16, #tpu.memory_space<vmem>>, vector<128x128xbf16>
    %cst_23 = arith.constant dense<0.000000e+00> : vector<16x128xf32>
    %29 = tpu.matmul %27, %28, %cst_23 {dimension_numbers = #tpu.dot_dimension_numbers<[1], [0], [0], [1], [0, 0, 1, 1], [], []>} : vector<16x128xbf16>, vector<128x128xbf16>, vector<16x128xf32> -> vector<16x128xf32>
    %c0_24 = arith.constant 0 : index
    %c0_25 = arith.constant 0 : index
    %30 = vector.load %arg9[%c0_24, %c0_25] : memref<1x128xf32, #tpu.memory_space<vmem>>, vector<1x128xf32>
    %31 = vector.broadcast %30 : vector<1x128xf32> to vector<16x128xf32>
    %32 = arith.addf %29, %31 : vector<16x128xf32>
    %cst_26 = arith.constant 0.000000e+00 : f32
    %33 = vector.broadcast %cst_26 : f32 to vector<16x128xf32>
    %34 = arith.maximumf %32, %33 : vector<16x128xf32>
    %35 = arith.truncf %34 : vector<16x128xf32> to vector<16x128xbf16>
    %c0_27 = arith.constant 0 : index
    %c0_28 = arith.constant 0 : index
    %36 = vector.load %arg10[%c0_27, %c0_28] : memref<128x128xbf16, #tpu.memory_space<vmem>>, vector<128x128xbf16>
    %cst_29 = arith.constant dense<0.000000e+00> : vector<16x128xf32>
    %37 = tpu.matmul %35, %36, %cst_29 {dimension_numbers = #tpu.dot_dimension_numbers<[1], [0], [0], [1], [0, 0, 1, 1], [], []>} : vector<16x128xbf16>, vector<128x128xbf16>, vector<16x128xf32> -> vector<16x128xf32>
    %c0_30 = arith.constant 0 : index
    %c0_31 = arith.constant 0 : index
    %38 = vector.load %arg11[%c0_30, %c0_31] : memref<1x128xf32, #tpu.memory_space<vmem>>, vector<1x128xf32>
    %39 = vector.broadcast %38 : vector<1x128xf32> to vector<16x128xf32>
    %40 = arith.addf %37, %39 : vector<16x128xf32>
    %cst_32 = arith.constant 0.000000e+00 : f32
    %41 = vector.broadcast %cst_32 : f32 to vector<16x128xf32>
    %42 = arith.maximumf %40, %41 : vector<16x128xf32>
    %43 = arith.truncf %42 : vector<16x128xf32> to vector<16x128xbf16>
    %c0_33 = arith.constant 0 : index
    %c0_34 = arith.constant 0 : index
    %44 = vector.load %arg12[%c0_33, %c0_34] : memref<128x128xbf16, #tpu.memory_space<vmem>>, vector<128x128xbf16>
    %cst_35 = arith.constant dense<0.000000e+00> : vector<16x128xf32>
    %45 = tpu.matmul %43, %44, %cst_35 {dimension_numbers = #tpu.dot_dimension_numbers<[1], [0], [0], [1], [0, 0, 1, 1], [], []>} : vector<16x128xbf16>, vector<128x128xbf16>, vector<16x128xf32> -> vector<16x128xf32>
    %c0_36 = arith.constant 0 : index
    %c0_37 = arith.constant 0 : index
    %46 = vector.load %arg13[%c0_36, %c0_37] : memref<1x128xf32, #tpu.memory_space<vmem>>, vector<1x128xf32>
    %47 = vector.broadcast %46 : vector<1x128xf32> to vector<16x128xf32>
    %48 = arith.addf %45, %47 : vector<16x128xf32>
    %c0_38 = arith.constant 0 : index
    %c0_39 = arith.constant 0 : index
    %49 = vector.load %arg15[%c0_38, %c0_39] : memref<16x128xf32, #tpu.memory_space<vmem>>, vector<16x128xf32>
    tpu.vector_store %arg15[%c0_38, %c0_39], %48 {strides = array<i32>} : memref<16x128xf32, #tpu.memory_space<vmem>>, vector<16x128xf32>,
    return
  }
  func.func @transform_0(%arg0: i32) -> (i32, i32) {
    %c0_i32 = arith.constant 0 : i32
    %c0_i32_0 = arith.constant 0 : i32
    return %arg0, %c0_i32 : i32, i32
  }
  func.func @transform_1(%arg0: i32) -> (i32, i32) {
    %c0_i32 = arith.constant 0 : i32
    %c0_i32_0 = arith.constant 0 : i32
    %c0_i32_1 = arith.constant 0 : i32
    return %c0_i32, %c0_i32_0 : i32, i32
  }
  func.func @transform_2(%arg0: i32) -> (i32, i32) {
    %c0_i32 = arith.constant 0 : i32
    %c0_i32_0 = arith.constant 0 : i32
    %c0_i32_1 = arith.constant 0 : i32
    return %c0_i32, %c0_i32_0 : i32, i32
  }
  func.func @transform_3(%arg0: i32) -> (i32, i32) {
    %c0_i32 = arith.constant 0 : i32
    %c0_i32_0 = arith.constant 0 : i32
    %c0_i32_1 = arith.constant 0 : i32
    return %c0_i32, %c0_i32_0 : i32, i32
  }
  func.func @transform_4(%arg0: i32) -> (i32, i32) {
    %c0_i32 = arith.constant 0 : i32
    %c0_i32_0 = arith.constant 0 : i32
    %c0_i32_1 = arith.constant 0 : i32
    return %c0_i32, %c0_i32_0 : i32, i32
  }
  func.func @transform_5(%arg0: i32) -> (i32, i32) {
    %c0_i32 = arith.constant 0 : i32
    %c0_i32_0 = arith.constant 0 : i32
    %c0_i32_1 = arith.constant 0 : i32
    return %c0_i32, %c0_i32_0 : i32, i32
  }
  func.func @transform_6(%arg0: i32) -> (i32, i32) {
    %c0_i32 = arith.constant 0 : i32
    %c0_i32_0 = arith.constant 0 : i32
    %c0_i32_1 = arith.constant 0 : i32
    return %c0_i32, %c0_i32_0 : i32, i32
  }
  func.func @transform_7(%arg0: i32) -> (i32, i32) {
    %c0_i32 = arith.constant 0 : i32
    %c0_i32_0 = arith.constant 0 : i32
    %c0_i32_1 = arith.constant 0 : i32
    return %c0_i32, %c0_i32_0 : i32, i32
  }
  func.func @transform_8(%arg0: i32) -> (i32, i32) {
    %c0_i32 = arith.constant 0 : i32
    %c0_i32_0 = arith.constant 0 : i32
    %c0_i32_1 = arith.constant 0 : i32
    return %c0_i32, %c0_i32_0 : i32, i32
  }
  func.func @transform_9(%arg0: i32) -> (i32, i32) {
    %c0_i32 = arith.constant 0 : i32
    %c0_i32_0 = arith.constant 0 : i32
    %c0_i32_1 = arith.constant 0 : i32
    return %c0_i32, %c0_i32_0 : i32, i32
  }
  func.func @transform_10(%arg0: i32) -> (i32, i32) {
    %c0_i32 = arith.constant 0 : i32
    %c0_i32_0 = arith.constant 0 : i32
    %c0_i32_1 = arith.constant 0 : i32
    return %c0_i32, %c0_i32_0 : i32, i32
  }
  func.func @transform_11(%arg0: i32) -> (i32, i32) {
    %c0_i32 = arith.constant 0 : i32
    %c0_i32_0 = arith.constant 0 : i32
    %c0_i32_1 = arith.constant 0 : i32
    return %c0_i32, %c0_i32_0 : i32, i32
  }
  func.func @transform_12(%arg0: i32) -> (i32, i32) {
    %c0_i32 = arith.constant 0 : i32
    %c0_i32_0 = arith.constant 0 : i32
    %c0_i32_1 = arith.constant 0 : i32
    return %c0_i32, %c0_i32_0 : i32, i32
  }
  func.func @transform_13(%arg0: i32) -> (i32, i32) {
    %c0_i32 = arith.constant 0 : i32
    %c0_i32_0 = arith.constant 0 : i32
    return %arg0, %c0_i32 : i32, i32
  }
  func.func @transform_14(%arg0: i32) -> (i32, i32) {
    %c0_i32 = arith.constant 0 : i32
    %c0_i32_0 = arith.constant 0 : i32
    return %arg0, %c0_i32 : i32, i32
  }
}

</mosaic_0001>

<bundles_post_ra>
// kernel: tpu_custom_call.1
= control target key start
LH: loop header
LB: loop body
LE: loop exit
PB: predicated region body
PF: predicated region fallthrough
CT: control target
= control target key end

     0   :  { %s2895_s0 = inlined_call_operand.vmem [shape: bf16[512,40], index: 0, kind: input, shape index: {}]   ;;  %s2896_s1 = inlined_call_operand.hbm [shape: bf16[40,128], index: 1, kind: input, shape index: {}]   ;;  %s2897_s2 = inlined_call_operand.vmem [shape: f32[1,128], index: 2, kind: input, shape index: {}]   ;;  %s2898_s3 = inlined_call_operand.vmem [shape: bf16[128,128], index: 3, kind: input, shape index: {}]   ;;  %s2899_s4 = inlined_call_operand.vmem [shape: f32[1,128], index: 4, kind: input, shape index: {}]   ;;  %s2900_s5 = inlined_call_operand.vmem [shape: bf16[128,128], index: 5, kind: input, shape index: {}]   ;;  %s2901_s6 = inlined_call_operand.vmem [shape: f32[1,128], index: 6, kind: input, shape index: {}]   ;;  %s2902_s7 = inlined_call_operand.vmem [shape: bf16[128,128], index: 7, kind: input, shape index: {}]   ;;  %s2903_s8 = inlined_call_operand.vmem [shape: f32[1,128], index: 8, kind: input, shape index: {}]   ;;  %s2904_s9 = inlined_call_operand.vmem [shape: bf16[128,128], index: 9, kind: input, shape index: {}]   ;;  %s2905_s10 = inlined_call_operand.vmem [shape: f32[1,128], index: 10, kind: input, shape index: {}]   ;;  %s2906_s11 = inlined_call_operand.vmem [shape: bf16[128,128], index: 11, kind: input, shape index: {}]   ;;  %s2907_s12 = inlined_call_operand.vmem [shape: f32[1,128], index: 12, kind: input, shape index: {}]   ;;  %s2908_s13 = inlined_call_operand.hbm [shape: f32[32,128], index: 13, kind: output, shape index: {0}]   ;;  %s2909_s14 = inlined_call_operand.hbm [shape: f32[32,128], index: 14, kind: output, shape index: {1}]  }
   0x1   :  { %2911 = sst [smem:[#allocation11_spill]] %s2895_s0 }
   0x2   :  { %2912 = sst [smem:[#allocation12_spill]] %s2896_s1 }
   0x3   :  { %2913 = sst [smem:[#allocation13_spill]] %s2897_s2 }
   0x4   :  { %2914 = sst [smem:[#allocation14_spill]] %s2898_s3 }
   0x5   :  { %2915 = sst [smem:[#allocation15_spill]] %s2899_s4 }
   0x6   :  { %2916 = sst [smem:[#allocation16_spill]] %s2900_s5 }
   0x7   :  { %2917 = sst [smem:[#allocation17_spill]] %s2901_s6 }
   0x8   :  { %2918 = sst [smem:[#allocation18_spill]] %s2902_s7 }
   0x9   :  { %20 = vsyncpa [#allocation3], 0 }
   0xa   :  { %21 = vsyncpa [#allocation4], 0 }
   0xb   :  { %23 = vsyncpa [#allocation4 + $0x1], 0 }
   0xc   :  { %24 = vsyncpa [#allocation7], 0 }
   0xd   :  { %26 = vsyncpa [#allocation7 + $0x1], 0  ;;  %s2455_s29 = smov 0   ;;  %s2457_s30 = smov 0  }
   0xe   :  { %s2459_s15 = smov 0   ;;  %s2461_s16 = smov 0  }
   0xf LB: > { %s2476_s17 = sadd.s32 4294967295, %s2373_s16   ;;  %s1835_s18 = sadd.s32 4294967294, %s2373_s16   ;;  %s2373_s16 = sphi %s2461_s16, %s2933_s16   ;;  %s2369_s15 = sphi %s2459_s15, %s2932_s15   ;;  %s2365_s30 = sphi %s2457_s30, %s2931_s30   ;;  %s2361_s29 = sphi %s2455_s29, %s2930_s29  }
  0x10   : > { %s2480_s19 = sadd.s32 1, %s2373_s16   ;;  %s317_s20 = sadd.s32 1, %s2369_s15 }
  0x11   : > { %s314_s21 = ssub.s32 %s2373_s16, %s2480_s19  ;;  %p327_p0 = scmp.ne.s32.totalorder %s2369_s15, %s2365_s30 }
  0x12   : > { %p315_p1 = scmp.eq.s32.totalorder %s314_s21, 0  ;;  %p328_p2 = scmp.eq.s32.totalorder %s2476_s17, 1 }
  0x13   : > { %p333_p3 = scmp.ne.s32.totalorder %s2365_s30, %s2361_s29  ;;  %p334_p4 = scmp.eq.s32.totalorder %s1835_s18, 1 }
  0x14   : > { %s2491_s22 = scalar_select %p315_p1, %s2369_s15, %s317_s20  }
  0x15   : > { %p2493_p5 = por %p328_p2, %p327_p0  ;;  %p2497_p6 = por %p334_p4, %p333_p3 }
  0x16   : > { %p1836_p7 = scmp.ge.s32.totalorder %s2373_s16, 1  ;;  %p367_p8 = scmp.lt.s32.totalorder %s2373_s16, 3 }
  0x17   : > { %p2199_p9 = scmp.eq.s32.totalorder %s2476_s17, 0  ;;  %s2921_s1 = sld [smem:[#allocation12_spill]] }
  0x18   : > { %p368_p10 = pnand %p1836_p7, %p367_p8  ;;  %s2375_s28 = smov [#allocation2]  }
  0x19   : > { %s380_s18 = sshll.u32 %s2375_s28, 4  ;;  %s2376_s20 = smov 64   ;;  %s381_s18 = int_to_ptr.vmem [resolvable:$true] %s380_s18 }
  0x1a   : > { %p2188_p11 = pneg %p368_p10  ;;  %s2377_s21 = smov 4  }
  0x1b   : > { %438 = sbr.rel (%p368_p10) target bundleno = 1178 (0x49a), region = 72 }
  0x1c   : > { %p2189_p12 = pnand %p2199_p9, %p2188_p11 }
  0x1d   : > { %s378_s27 = sshll.u32 %s2921_s1, 4  ;;  %s379_s27 = int_to_ptr.hbm [resolvable:$true] %s378_s27 }
  0x1e   : > { %2191 = dma.hbm_to_vmem [thread:$0]  (!%p2189_p12), %s379_s27, 320, %s381_s18, [#allocation3], %s2376_s20, %s2376_s20, %s2377_s21  }
  0x20   : > { %2348 = dma.done.wait (%p2199_p9), [#allocation3], 320  }
  0x21   : > { %2350 = vsyncadd (%p2199_p9), [#allocation3], 4294966976  ;;  %s1843_s25 = sshll.u32 %s2476_s17, 5  ;;  %v535_v0 = vld [vmem:[#allocation2 + $0x10] sm:$0xf]  ;;  %vm684_vm0 = vcmask 1043456  }
  0x22   : > { %p491_p13 = scmp.lt.s32.totalorder %s1843_s25, 63  ;;  %v629_v1 = vunpack.c.l.b16 %v535_v0  ;;  %v2118_v4 = vld [vmem:[#allocation2 + $0x8] sm:$0xff]  ;;  %v2117_v5 = vld [vmem:[#allocation2] sm:$0xff]  ;;  %s2922_s0 = sld [smem:[#allocation11_spill]]  ;;  %vm635_vm1 = vcmask 326656   ;;  %vm1347_vm2 = vcmask 1041409  }
  0x23   : > { %s2923_s3 = sld [smem:[#allocation14_spill]]  ;;  %vm1349_vm3 = vcmask 1042434   ;;  %vm1351_vm4 = vcmask 1043459   ;;  %vm1353_vm5 = vcmask 1044484   ;;  %vm1355_vm6 = vcmask 1045509  }
  0x24   : > { %s2935_s25 = smov (!%p491_p13, %s1843_s25), 63  ;;  %v632_v2 = vpack.c.b16 %v629_v1, %v629_v1  ;;  %s2924_s2 = sld [smem:[#allocation13_spill]]  ;;  %vm1357_vm7 = vcmask 1046534   ;;  %vm1359_vm8 = vcmask 1047559  }
  0x25   : > { %s1844_s26 = sshll.u32 %s2935_s25, 2  ;;  %s2925_s5 = sld [smem:[#allocation16_spill]] }
  0x26   : > { %v686_v3 = vsel %vm684_vm0, %v632_v2, 0  ;;  %s2926_s4 = sld [smem:[#allocation15_spill]] }
  0x27   : > { %693 = vmatpush.bf16.msra.mxu0 %v686_v3  ;;  %2161 = vmatpush.bf16.msra.mxu3 %v686_v3  ;;  %s2927_s6 = sld [smem:[#allocation17_spill]] }
  0x28   : > { %s2517_s18 = scalar_lea.vmem %s2922_s0, %s1844_s26  ;;  %s2928_s7 = sld [smem:[#allocation18_spill]] }
  0x29   : > { %v2101_v6 = vld [vmem:[%s2517_s18] sm:$0xff]  ;;  %v2102_v7 = vld [vmem:[%s2517_s18 + $0x8] sm:$0xff]  ;;  %v2103_v8 = vld [vmem:[%s2517_s18 + $0x10] sm:$0xff] }
  0x2a   : > { %v2104_v9 = vld [vmem:[%s2517_s18 + $0x18] sm:$0xff]  ;;  %v2105_v10 = vld [vmem:[%s2517_s18 + $0x20] sm:$0xff]  ;;  %v2106_v12 = vld [vmem:[%s2517_s18 + $0x28] sm:$0xff] }
  0x2b   : > { %694 = vmatpush.bf16.msra.mxu0 %v2118_v4  ;;  %2162 = vmatpush.bf16.msra.mxu3 %v2118_v4  ;;  %v2126_v11 = vld [vmem:[%s2923_s3 + $0x38] sm:$0xff]  ;;  %v2125_v13 = vld [vmem:[%s2923_s3 + $0x30] sm:$0xff]  ;;  %v2124_v14 = vld [vmem:[%s2923_s3 + $0x28] sm:$0xff] }
  0x2c   : > { %893 = vmatpush.bf16.msra.mxu1 %v2126_v11  ;;  %v2123_v15 = vld [vmem:[%s2923_s3 + $0x20] sm:$0xff]  ;;  %v2122_v16 = vld [vmem:[%s2923_s3 + $0x18] sm:$0xff]  ;;  %v2107_v17 = vld [vmem:[%s2517_s18 + $0x30] sm:$0xff] }
  0x2d   : > { %v2121_v18 = vld [vmem:[%s2923_s3 + $0x10] sm:$0xff]  ;;  %v2120_v19 = vld [vmem:[%s2923_s3 + $0x8] sm:$0xff]  ;;  %v2119_v20 = vld [vmem:[%s2923_s3] sm:$0xff] }
  0x2e   : > { %v2108_v21 = vld [vmem:[%s2517_s18 + $0x38] sm:$0xff]  ;;  %v2109_v22 = vld [vmem:[%s2517_s18 + $0x40] sm:$0xff]  ;;  %v2110_v31 = vld [vmem:[%s2517_s18 + $0x48] sm:$0xff] }
  0x2f   : > { %695 = vmatpush.bf16.msra.mxu0 %v2117_v5  ;;  %2163 = vmatpush.bf16.msra.mxu3 %v2117_v5  ;;  %v2563_v24 = vld [vmem:[%s2924_s2] ss:$0 sm:$0xff]  ;;  %v2111_v39 = vld [vmem:[%s2517_s18 + $0x50] sm:$0xff]  ;;  %v2112_v47 = vld [vmem:[%s2517_s18 + $0x58] sm:$0xff] }
  0x30   : > { %894 = vmatpush.bf16.msra.mxu1 %v2125_v13  ;;  %v2115_v49 = vld [vmem:[%s2517_s18 + $0x70] sm:$0xff]  ;;  %v2113_v56 = vld [vmem:[%s2517_s18 + $0x60] sm:$0xff]  ;;  %v2116_v58 = vld [vmem:[%s2517_s18 + $0x78] sm:$0xff] }
  0x31   : > { %v2114_v1 = vld [vmem:[%s2517_s18 + $0x68] sm:$0xff]  ;;  %s2710_s18 = sand.u32 1, %s2365_s30  }
  0x32   : > { %1917 = vmatmul.msk.bf16.vlgmr.msra.gmra.mxu0 %vm635_vm1, %v2101_v6  ;;  %1931 = vmatmul.msk.bf16.vlgmr.msra.gmra.mxu3 %vm635_vm1, %v2115_v49  ;;  %v2134_v6 = vld [vmem:[%s2925_s5 + $0x38] sm:$0xff]  ;;  %s2910_s21 = sshll.u32 %s2710_s18, 4  ;;  %s1691_s26 = scalar_lea.sflag [#allocation4], %s2710_s18 }
  0x33   : > { %2164 = vmatpush.bf16.msrb.mxu3 %v2126_v11  ;;  %1098 = vmatpush.bf16.msra.mxu2 %v2134_v6  ;;  %s2721_s25 = scalar_lea.vmem [#allocation5], %s2910_s21  ;;  %s2159_s21 = sshll.u32 %s2476_s17, 4 }
  0x34   : > { %895 = vmatpush.bf16.msra.mxu1 %v2124_v14  ;;  %s1707_s28 = scalar_lea.hbm %s2908_s13, %s2159_s21 }
  0x35   : > { %s1710_s20 = sshll.u32 %s1707_s28, 4  ;;  %s1711_s20 = int_to_ptr.hbm [resolvable:$true] %s1710_s20 }
  0x36   : > { %s2289_s1 = sshra.s32 %s1711_s20, 4  ;;  %s2290_s1 = int_to_ptr.hbm [resolvable:$true] %s2289_s1 }
  0x37   : > { %2165 = vmatpush.bf16.msrb.mxu3 %v2125_v13  ;;  %v2131_v13 = vld [vmem:[%s2925_s5 + $0x20] sm:$0xff]  ;;  %s2291_s2 = scalar_lea.hbm %s2290_s1, 16  ;;  %p2296_p3 = scmp.lt.s32.totalorder %s2290_s1, %s2908_s13 }
  0x38   : > { %896 = vmatpush.bf16.msra.mxu1 %v2123_v15  ;;  %p2292_p0 = scmp.ne.s32.totalorder %s2290_s1, %s2291_s2 }
  0x3a   : > { %p2293_p1 = pnand %p2292_p0, %p2493_p5 }
  0x3b   : > { %2166 = vmatpush.bf16.msrb.mxu3 %v2124_v14 }
  0x3c   : > { %897 = vmatpush.bf16.msra.mxu1 %v2122_v16  ;;  %p2294_p2 = pneg %p2293_p1 }
  0x3f   : > { %2167 = vmatpush.bf16.msrb.mxu3 %v2123_v15 }
  0x40   : > { %898 = vmatpush.bf16.msra.mxu1 %v2121_v18 }
  0x42   : > { %1918 = vmatmul.msk.bf16.gmra.mxu0 %vm635_vm1, %v2102_v7  ;;  %1932 = vmatmul.msk.bf16.gmra.mxu3 %vm635_vm1, %v2116_v58 }
  0x43   : > { %2168 = vmatpush.bf16.msrb.mxu3 %v2122_v16 }
  0x44   : > { %899 = vmatpush.bf16.msra.mxu1 %v2120_v19 }
  0x47   : > { %2169 = vmatpush.bf16.msrb.mxu3 %v2121_v18 }
  0x48   : > { %900 = vmatpush.bf16.msra.mxu1 %v2119_v20 }
  0x4b   : > { %2170 = vmatpush.bf16.msrb.mxu3 %v2120_v19 }
  0x4f   : > { %2171 = vmatpush.bf16.msrb.mxu3 %v2119_v20 }
  0x52   : > { %1919 = vmatmul.msk.bf16.gmra.mxu0 %vm635_vm1, %v2103_v8 }
  0x53   : > { %2172 = vmatpush.bf16.msra.mxu3 %v2134_v6 }
  0x62   : > { %1920 = vmatmul.msk.bf16.gmra.mxu0 %vm635_vm1, %v2104_v9 }
  0x72   : > { %1921 = vmatmul.msk.bf16.gmra.mxu0 %vm635_vm1, %v2105_v10  ;;  %v2133_v10 = vld [vmem:[%s2925_s5 + $0x30] sm:$0xff] }
  0x73   : > { %1099 = vmatpush.bf16.msra.mxu2 %v2133_v10  ;;  %2173 = vmatpush.bf16.msra.mxu3 %v2133_v10 }
  0x82   : > { %1922 = vmatmul.msk.bf16.gmra.mxu0 %vm635_vm1, %v2106_v12  ;;  %v2132_v12 = vld [vmem:[%s2925_s5 + $0x28] sm:$0xff] }
  0x83   : > { %1100 = vmatpush.bf16.msra.mxu2 %v2132_v12  ;;  %2174 = vmatpush.bf16.msra.mxu3 %v2132_v12 }
  0x87   : > { %1101 = vmatpush.bf16.msra.mxu2 %v2131_v13  ;;  %2175 = vmatpush.bf16.msra.mxu3 %v2131_v13 }
  0x92   : > { %1923 = vmatmul.msk.bf16.gmra.mxu0 %vm635_vm1, %v2107_v17  ;;  %v2130_v17 = vld [vmem:[%s2925_s5 + $0x18] sm:$0xff] }
  0x93   : > { %1102 = vmatpush.bf16.msra.mxu2 %v2130_v17  ;;  %2176 = vmatpush.bf16.msra.mxu3 %v2130_v17 }
  0xa2   : > { %1924 = vmatmul.msk.bf16.gmra.mxu0 %vm635_vm1, %v2108_v21  ;;  %v2129_v21 = vld [vmem:[%s2925_s5 + $0x10] sm:$0xff] }
  0xa3   : > { %1103 = vmatpush.bf16.msra.mxu2 %v2129_v21  ;;  %2177 = vmatpush.bf16.msra.mxu3 %v2129_v21 }
  0xaf   : > { %v697_v23 = vpop.f32.mrf.mxu0 }
  0xb0   : > { %v698_v25 = vadd.f32 %v2563_v24, %v697_v23  ;;  %v2128_v23 = vld [vmem:[%s2925_s5 + $0x8] sm:$0xff] }
  0xb1   : > { %1104 = vmatpush.bf16.msra.mxu2 %v2128_v23  ;;  %2178 = vmatpush.bf16.msra.mxu3 %v2128_v23 }
  0xb2   : > { %1925 = vmatmul.msk.bf16.gmra.mxu0 %vm635_vm1, %v2109_v22  ;;  %v777_v28 = vmax.f32 %v698_v25, 0.0  ;;  %v2127_v25 = vld [vmem:[%s2925_s5] sm:$0xff] }
  0xb5   : > { %1105 = vmatpush.bf16.msra.mxu2 %v2127_v25  ;;  %2179 = vmatpush.bf16.msra.mxu3 %v2127_v25 }
  0xb7   : > { %v699_v26 = vpop.f32.mrf.mxu0 }
  0xb8   : > { %v700_v27 = vadd.f32 %v2563_v24, %v699_v26 }
  0xba   : > { %v778_v29 = vmax.f32 %v700_v27, 0.0 }
  0xbc   : > { %v809_v30 = vpack.c.bf16 %v778_v29, %v777_v28 }
  0xbe   : > { %901 = vmatmul.bf16.vlgmr.msra.gmra.mxu1 %v809_v30 }
  0xbf   : > { %v702_v32 = vpop.f32.mrf.mxu0 }
  0xc0   : > { %v703_v33 = vadd.f32 %v2563_v24, %v702_v32 }
  0xc2   : > { %1926 = vmatmul.msk.bf16.gmra.mxu0 %vm635_vm1, %v2110_v31  ;;  %v779_v36 = vmax.f32 %v703_v33, 0.0 }
  0xc7   : > { %v704_v34 = vpop.f32.mrf.mxu0 }
  0xc8   : > { %v705_v35 = vadd.f32 %v2563_v24, %v704_v34 }
  0xca   : > { %v780_v37 = vmax.f32 %v705_v35, 0.0 }
  0xcc   : > { %v810_v38 = vpack.c.bf16 %v780_v37, %v779_v36 }
  0xce   : > { %906 = vmatmul.bf16.gmra.mxu1 %v810_v38 }
  0xcf   : > { %v707_v40 = vpop.f32.mrf.mxu0 }
  0xd0   : > { %v708_v41 = vadd.f32 %v2563_v24, %v707_v40  ;;  %v2625_v40 = vld [vmem:[%s2926_s4] ss:$0 sm:$0xff]  ;;  %s1708_s4 = sshll.u32 %s2721_s25, 4  ;;  %s1709_s4 = int_to_ptr.vmem [resolvable:$true] %s1708_s4 }
  0xd2   : > { %1927 = vmatmul.msk.bf16.gmra.mxu0 %vm635_vm1, %v2111_v39  ;;  %v781_v44 = vmax.f32 %v708_v41, 0.0 }
  0xd7   : > { %v709_v42 = vpop.f32.mrf.mxu0 }
  0xd8   : > { %v710_v43 = vadd.f32 %v2563_v24, %v709_v42 }
  0xda   : > { %v782_v45 = vmax.f32 %v710_v43, 0.0 }
  0xdc   : > { %v811_v46 = vpack.c.bf16 %v782_v45, %v781_v44 }
  0xde   : > { %911 = vmatmul.bf16.gmra.mxu1 %v811_v46 }
  0xdf   : > { %v712_v48 = vpop.f32.mrf.mxu0 }
  0xe0   : > { %v713_v50 = vadd.f32 %v2563_v24, %v712_v48 }
  0xe2   : > { %1928 = vmatmul.msk.bf16.gmra.mxu0 %vm635_vm1, %v2112_v47  ;;  %v783_v53 = vmax.f32 %v713_v50, 0.0 }
  0xe7   : > { %v714_v51 = vpop.f32.mrf.mxu0 }
  0xe8   : > { %v715_v52 = vadd.f32 %v2563_v24, %v714_v51 }
  0xea   : > { %v784_v54 = vmax.f32 %v715_v52, 0.0 }
  0xec   : > { %v812_v55 = vpack.c.bf16 %v784_v54, %v783_v53 }
  0xee   : > { %916 = vmatmul.bf16.gmra.mxu1 %v812_v55 }
  0xef   : > { %v717_v57 = vpop.f32.mrf.mxu0 }
  0xf0   : > { %v718_v59 = vadd.f32 %v2563_v24, %v717_v57 }
  0xf2   : > { %1929 = vmatmul.msk.bf16.gmra.mxu0 %vm635_vm1, %v2113_v56  ;;  %v785_v62 = vmax.f32 %v718_v59, 0.0 }
  0xf7   : > { %v719_v60 = vpop.f32.mrf.mxu0 }
  0xf8   : > { %v720_v61 = vadd.f32 %v2563_v24, %v719_v60 }
  0xfa   : > { %v786_v63 = vmax.f32 %v720_v61, 0.0 }
  0xfc   : > { %v813_v0 = vpack.c.bf16 %v786_v63, %v785_v62 }
  0xfe   : > { %921 = vmatmul.bf16.gmra.mxu1 %v813_v0 }
  0xff   : > { %v722_v2 = vpop.f32.mrf.mxu0 }
 0x100   : > { %v723_v3 = vadd.f32 %v2563_v24, %v722_v2 }
 0x102   : > { %1930 = vmatmul.msk.bf16.gmra.mxu0 %vm635_vm1, %v2114_v1  ;;  %v787_v7 = vmax.f32 %v723_v3, 0.0 }
 0x107   : > { %v724_v4 = vpop.f32.mrf.mxu0 }
 0x108   : > { %v725_v5 = vadd.f32 %v2563_v24, %v724_v4 }
 0x10a   : > { %v788_v8 = vmax.f32 %v725_v5, 0.0 }
 0x10c   : > { %v814_v9 = vpack.c.bf16 %v788_v8, %v787_v7 }
 0x10e   : > { %926 = vmatmul.bf16.gmra.mxu1 %v814_v9 }
 0x10f   : > { %v727_v11 = vpop.f32.mrf.mxu0 }
 0x110   : > { %v728_v14 = vadd.f32 %v2563_v24, %v727_v11 }
 0x112   : > { %v789_v18 = vmax.f32 %v728_v14, 0.0 }
 0x117   : > { %v729_v15 = vpop.f32.mrf.mxu0 }
 0x118   : > { %v730_v16 = vadd.f32 %v2563_v24, %v729_v15 }
 0x11a   : > { %v790_v19 = vmax.f32 %v730_v16, 0.0 }
 0x11c   : > { %v815_v20 = vpack.c.bf16 %v790_v19, %v789_v18 }
 0x11e   : > { %931 = vmatmul.bf16.gmra.mxu1 %v815_v20 }
 0x11f   : > { %v732_v22 = vpop.f32.mrf.mxu0 }
 0x120   : > { %v733_v26 = vadd.f32 %v2563_v24, %v732_v22 }
 0x122   : > { %v791_v29 = vmax.f32 %v733_v26, 0.0 }
 0x127   : > { %v734_v27 = vpop.f32.mrf.mxu0 }
 0x128   : > { %v735_v28 = vadd.f32 %v2563_v24, %v734_v27 }
 0x12a   : > { %v792_v30 = vmax.f32 %v735_v28, 0.0 }
 0x12c   : > { %v816_v31 = vpack.c.bf16 %v792_v30, %v791_v29 }
 0x12e   : > { %936 = vmatmul.bf16.gmra.mxu1 %v816_v31 }
 0x12f   : > { %v737_v32 = vpop.f32.mrf.mxu0 }
 0x130   : > { %v738_v33 = vadd.f32 %v2563_v24, %v737_v32 }
 0x132   : > { %v793_v36 = vmax.f32 %v738_v33, 0.0 }
 0x137   : > { %v739_v34 = vpop.f32.mrf.mxu0 }
 0x138   : > { %v740_v35 = vadd.f32 %v2563_v24, %v739_v34 }
 0x13a   : > { %v794_v37 = vmax.f32 %v740_v35, 0.0 }
 0x13b   : > { %v902_v38 = vpop.f32.mrf.mxu1 }
 0x13c   : > { %v817_v39 = vpack.c.bf16 %v794_v37, %v793_v36  ;;  %v903_v42 = vadd.f32 %v2625_v40, %v902_v38  ;;  %v767_v37 = vpop.f32.mrf.mxu3 }
 0x13e   : > { %941 = vmatmul.bf16.gmra.mxu1 %v817_v39  ;;  %v982_v45 = vmax.f32 %v903_v42, 0.0 }
 0x13f   : > { %v742_v41 = vpop.f32.mrf.mxu0 }
 0x140   : > { %v743_v46 = vadd.f32 %v2563_v24, %v742_v41 }
 0x142   : > { %v795_v51 = vmax.f32 %v743_v46, 0.0 }
 0x143   : > { %v904_v43 = vpop.f32.mrf.mxu1 }
 0x144   : > { %v905_v44 = vadd.f32 %v2625_v40, %v904_v43 }
 0x146   : > { %v983_v47 = vmax.f32 %v905_v44, 0.0 }
 0x147   : > { %v744_v48 = vpop.f32.mrf.mxu0 }
 0x148   : > { %v745_v49 = vadd.f32 %v2563_v24, %v744_v48  ;;  %v1014_v50 = vpack.c.bf16 %v983_v47, %v982_v45 }
 0x14a   : > { %v796_v52 = vmax.f32 %v745_v49, 0.0  ;;  %1106 = vmatmul.bf16.vlgmr.msra.gmra.mxu2 %v1014_v50  ;;  %v769_v50 = vpop.f32.mrf.mxu3 }
 0x14b   : > { %v907_v53 = vpop.f32.mrf.mxu1 }
 0x14c   : > { %v818_v54 = vpack.c.bf16 %v796_v52, %v795_v51  ;;  %v908_v56 = vadd.f32 %v2625_v40, %v907_v53  ;;  %v768_v53 = vadd.f32 %v2563_v24, %v767_v37 }
 0x14e   : > { %946 = vmatmul.bf16.gmra.mxu1 %v818_v54  ;;  %v984_v59 = vmax.f32 %v908_v56, 0.0  ;;  %v770_v54 = vadd.f32 %v2563_v24, %v769_v50 }
 0x14f   : > { %v747_v55 = vpop.f32.mrf.mxu0 }
 0x150   : > { %v748_v60 = vadd.f32 %v2563_v24, %v747_v55 }
 0x152   : > { %v797_v1 = vmax.f32 %v748_v60, 0.0  ;;  %v806_v60 = vmax.f32 %v770_v54, 0.0 }
 0x153   : > { %v909_v57 = vpop.f32.mrf.mxu1 }
 0x154   : > { %v910_v58 = vadd.f32 %v2625_v40, %v909_v57 }
 0x156   : > { %v985_v61 = vmax.f32 %v910_v58, 0.0  ;;  %v772_v58 = vpop.f32.mrf.mxu3 }
 0x157   : > { %v749_v62 = vpop.f32.mrf.mxu0 }
 0x158   : > { %v750_v63 = vadd.f32 %v2563_v24, %v749_v62  ;;  %v1015_v0 = vpack.c.bf16 %v985_v61, %v984_v59  ;;  %v805_v59 = vmax.f32 %v768_v53, 0.0 }
 0x15a   : > { %v798_v2 = vmax.f32 %v750_v63, 0.0  ;;  %1111 = vmatmul.bf16.gmra.mxu2 %v1015_v0  ;;  %v823_v63 = vpack.c.bf16 %v806_v60, %v805_v59 }
 0x15b   : > { %v912_v3 = vpop.f32.mrf.mxu1 }
 0x15c   : > { %v819_v4 = vpack.c.bf16 %v798_v2, %v797_v1  ;;  %v913_v6 = vadd.f32 %v2625_v40, %v912_v3  ;;  %v773_v3 = vadd.f32 %v2563_v24, %v772_v58 }
 0x15e   : > { %951 = vmatmul.bf16.gmra.mxu1 %v819_v4  ;;  %v986_v9 = vmax.f32 %v913_v6, 0.0  ;;  %v774_v0 = vpop.f32.mrf.mxu3 }
 0x15f   : > { %v752_v5 = vpop.f32.mrf.mxu0  ;;  %v775_v4 = vadd.f32 %v2563_v24, %v774_v0 }
 0x160   : > { %v753_v10 = vadd.f32 %v2563_v24, %v752_v5 }
 0x162   : > { %v799_v15 = vmax.f32 %v753_v10, 0.0 }
 0x163   : > { %v914_v7 = vpop.f32.mrf.mxu1 }
 0x164   : > { %v915_v8 = vadd.f32 %v2625_v40, %v914_v7 }
 0x166   : > { %v987_v11 = vmax.f32 %v915_v8, 0.0  ;;  %v807_v8 = vmax.f32 %v773_v3, 0.0 }
 0x167   : > { %v754_v12 = vpop.f32.mrf.mxu0 }
 0x168   : > { %v755_v13 = vadd.f32 %v2563_v24, %v754_v12  ;;  %v1016_v14 = vpack.c.bf16 %v987_v11, %v986_v9  ;;  %v808_v9 = vmax.f32 %v775_v4, 0.0 }
 0x16a   : > { %v800_v16 = vmax.f32 %v755_v13, 0.0  ;;  %1116 = vmatmul.bf16.gmra.mxu2 %v1016_v14  ;;  %v824_v12 = vpack.c.bf16 %v808_v9, %v807_v8 }
 0x16b   : > { %v917_v17 = vpop.f32.mrf.mxu1 }
 0x16c   : > { %v820_v18 = vpack.c.bf16 %v800_v16, %v799_v15  ;;  %v918_v20 = vadd.f32 %v2625_v40, %v917_v17 }
 0x16e   : > { %956 = vmatmul.bf16.gmra.mxu1 %v820_v18  ;;  %v988_v23 = vmax.f32 %v918_v20, 0.0 }
 0x16f   : > { %v757_v19 = vpop.f32.mrf.mxu0 }
 0x170   : > { %v758_v25 = vadd.f32 %v2563_v24, %v757_v19 }
 0x172   : > { %v801_v30 = vmax.f32 %v758_v25, 0.0 }
 0x173   : > { %v919_v21 = vpop.f32.mrf.mxu1 }
 0x174   : > { %v920_v22 = vadd.f32 %v2625_v40, %v919_v21 }
 0x176   : > { %v989_v26 = vmax.f32 %v920_v22, 0.0 }
 0x177   : > { %v759_v27 = vpop.f32.mrf.mxu0 }
 0x178   : > { %v760_v28 = vadd.f32 %v2563_v24, %v759_v27  ;;  %v1017_v29 = vpack.c.bf16 %v989_v26, %v988_v23 }
 0x17a   : > { %v802_v31 = vmax.f32 %v760_v28, 0.0  ;;  %1121 = vmatmul.bf16.gmra.mxu2 %v1017_v29  ;;  %v2662_v28 = vld [vmem:[%s2927_s6] ss:$0 sm:$0xff] }
 0x17b   : > { %v922_v32 = vpop.f32.mrf.mxu1 }
 0x17c   : > { %v821_v33 = vpack.c.bf16 %v802_v31, %v801_v30  ;;  %v923_v35 = vadd.f32 %v2625_v40, %v922_v32 }
 0x17e   : > { %961 = vmatmul.bf16.gmra.mxu1 %v821_v33  ;;  %v990_v39 = vmax.f32 %v923_v35, 0.0 }
 0x17f   : > { %v762_v34 = vpop.f32.mrf.mxu0 }
 0x180   : > { %v763_v41 = vadd.f32 %v2563_v24, %v762_v34 }
 0x182   : > { %v803_v46 = vmax.f32 %v763_v41, 0.0 }
 0x183   : > { %v924_v36 = vpop.f32.mrf.mxu1 }
 0x184   : > { %v925_v38 = vadd.f32 %v2625_v40, %v924_v36 }
 0x186   : > { %v991_v42 = vmax.f32 %v925_v38, 0.0 }
 0x187   : > { %v764_v43 = vpop.f32.mrf.mxu0 }
 0x188   : > { %v765_v44 = vadd.f32 %v2563_v24, %v764_v43  ;;  %v1018_v45 = vpack.c.bf16 %v991_v42, %v990_v39 }
 0x18a   : > { %v804_v47 = vmax.f32 %v765_v44, 0.0  ;;  %1126 = vmatmul.bf16.gmra.mxu2 %v1018_v45 }
 0x18b   : > { %v927_v48 = vpop.f32.mrf.mxu1 }
 0x18c   : > { %v822_v49 = vpack.c.bf16 %v804_v47, %v803_v46  ;;  %v928_v51 = vadd.f32 %v2625_v40, %v927_v48 }
 0x18e   : > { %966 = vmatmul.bf16.vlgmr.msrb.gmra.mxu3 %v822_v49  ;;  %v992_v56 = vmax.f32 %v928_v51, 0.0 }
 0x193   : > { %v929_v52 = vpop.f32.mrf.mxu1 }
 0x194   : > { %v930_v55 = vadd.f32 %v2625_v40, %v929_v52 }
 0x196   : > { %v993_v57 = vmax.f32 %v930_v55, 0.0 }
 0x198   : > { %v1019_v61 = vpack.c.bf16 %v993_v57, %v992_v56 }
 0x19a   : > { %1131 = vmatmul.bf16.gmra.mxu2 %v1019_v61 }
 0x19b   : > { %v932_v62 = vpop.f32.mrf.mxu1 }
 0x19c   : > { %v933_v1 = vadd.f32 %v2625_v40, %v932_v62 }
 0x19e   : > { %971 = vmatmul.bf16.gmra.mxu3 %v823_v63  ;;  %v994_v6 = vmax.f32 %v933_v1, 0.0 }
 0x1a3   : > { %v934_v2 = vpop.f32.mrf.mxu1 }
 0x1a4   : > { %v935_v5 = vadd.f32 %v2625_v40, %v934_v2 }
 0x1a6   : > { %v995_v7 = vmax.f32 %v935_v5, 0.0 }
 0x1a8   : > { %v1020_v10 = vpack.c.bf16 %v995_v7, %v994_v6 }
 0x1aa   : > { %1136 = vmatmul.bf16.gmra.mxu2 %v1020_v10 }
 0x1ab   : > { %v937_v11 = vpop.f32.mrf.mxu1 }
 0x1ac   : > { %v938_v13 = vadd.f32 %v2625_v40, %v937_v11 }
 0x1ae   : > { %976 = vmatmul.bf16.gmra.mxu3 %v824_v12  ;;  %v996_v16 = vmax.f32 %v938_v13, 0.0 }
 0x1b3   : > { %v939_v14 = vpop.f32.mrf.mxu1 }
 0x1b4   : > { %v940_v15 = vadd.f32 %v2625_v40, %v939_v14 }
 0x1b6   : > { %v997_v17 = vmax.f32 %v940_v15, 0.0 }
 0x1b8   : > { %v1021_v18 = vpack.c.bf16 %v997_v17, %v996_v16 }
 0x1ba   : > { %1141 = vmatmul.bf16.gmra.mxu2 %v1021_v18 }
 0x1bb   : > { %v942_v24 = vpop.f32.mrf.mxu1 }
 0x1bc   : > { %v943_v19 = vadd.f32 %v2625_v40, %v942_v24 }
 0x1be   : > { %v998_v22 = vmax.f32 %v943_v19, 0.0 }
 0x1c3   : > { %v944_v20 = vpop.f32.mrf.mxu1 }
 0x1c4   : > { %v945_v21 = vadd.f32 %v2625_v40, %v944_v20 }
 0x1c6   : > { %v999_v23 = vmax.f32 %v945_v21, 0.0 }
 0x1c8   : > { %v1022_v25 = vpack.c.bf16 %v999_v23, %v998_v22 }
 0x1ca   : > { %1146 = vmatmul.bf16.gmra.mxu2 %v1022_v25 }
 0x1cb   : > { %v947_v26 = vpop.f32.mrf.mxu1 }
 0x1cc   : > { %v948_v29 = vadd.f32 %v2625_v40, %v947_v26 }
 0x1cd   : > { %v1107_v27 = vpop.f32.mrf.mxu2 }
 0x1ce   : > { %v1108_v31 = vadd.f32 %v2662_v28, %v1107_v27  ;;  %v1000_v34 = vmax.f32 %v948_v29, 0.0 }
 0x1d0   : > { %v1187_v37 = vmax.f32 %v1108_v31, 0.0 }
 0x1d3   : > { %v949_v30 = vpop.f32.mrf.mxu1 }
 0x1d4   : > { %v950_v32 = vadd.f32 %v2625_v40, %v949_v30 }
 0x1d5   : > { %v1109_v33 = vpop.f32.mrf.mxu2 }
 0x1d6   : > { %v1001_v35 = vmax.f32 %v950_v32, 0.0  ;;  %v1110_v36 = vadd.f32 %v2662_v28, %v1109_v33 }
 0x1d8   : > { %v1188_v38 = vmax.f32 %v1110_v36, 0.0  ;;  %v1023_v39 = vpack.c.bf16 %v1001_v35, %v1000_v34 }
 0x1da   : > { %v1219_v41 = vmax.f32 %v1187_v37, %v1188_v38  ;;  %1151 = vmatmul.bf16.gmra.mxu2 %v1023_v39 }
 0x1db   : > { %v952_v42 = vpop.f32.mrf.mxu1 }
 0x1dc   : > { %v1220_v43 = vrot.slane %v1219_v41, 4  ;;  %v953_v46 = vadd.f32 %v2625_v40, %v952_v42 }
 0x1dd   : > { %v1112_v44 = vpop.f32.mrf.mxu2 }
 0x1de   : > { %v1221_v45 = vmax.f32 %v1219_v41, %v1220_v43  ;;  %v1113_v48 = vadd.f32 %v2662_v28, %v1112_v44  ;;  %v1002_v52 = vmax.f32 %v953_v46, 0.0 }
 0x1e0   : > { %v1222_v50 = vrot.slane %v1221_v45, 2  ;;  %v1189_v55 = vmax.f32 %v1113_v48, 0.0 }
 0x1e2   : > { %v1223_v58 = vmax.f32 %v1221_v45, %v1222_v50 }
 0x1e3   : > { %v954_v47 = vpop.f32.mrf.mxu1 }
 0x1e4   : > { %v955_v49 = vadd.f32 %v2625_v40, %v954_v47  ;;  %v1224_v62 = vrot.slane %v1223_v58, 1 }
 0x1e5   : > { %v1114_v51 = vpop.f32.mrf.mxu2 }
 0x1e6   : > { %v1003_v53 = vmax.f32 %v955_v49, 0.0  ;;  %v1115_v54 = vadd.f32 %v2662_v28, %v1114_v51  ;;  %v1225_v2 = vmax.f32 %v1223_v58, %v1224_v62 }
 0x1e8   : > { %v1190_v56 = vmax.f32 %v1115_v54, 0.0  ;;  %v1024_v57 = vpack.c.bf16 %v1003_v53, %v1002_v52  ;;  %v1372_v9 = vpack.c.bf16 %v1225_v2, %v1225_v2 }
 0x1ea   : > { %v1226_v59 = vmax.f32 %v1189_v55, %v1190_v56  ;;  %1156 = vmatmul.bf16.gmra.mxu2 %v1024_v57  ;;  %v1424_v19 = vunpack.c.l.b16 %v1372_v9 }
 0x1eb   : > { %v957_v60 = vpop.f32.mrf.mxu1 }
 0x1ec   : > { %v1227_v61 = vrot.slane %v1226_v59, 4  ;;  %v958_v4 = vadd.f32 %v2625_v40, %v957_v60 }
 0x1ed   : > { %v1117_v63 = vpop.f32.mrf.mxu2 }
 0x1ee   : > { %v1228_v0 = vmax.f32 %v1226_v59, %v1227_v61  ;;  %v1118_v5 = vadd.f32 %v2662_v28, %v1117_v63  ;;  %v1004_v12 = vmax.f32 %v958_v4, 0.0 }
 0x1f0   : > { %v1229_v1 = vrot.slane %v1228_v0, 2  ;;  %v1191_v15 = vmax.f32 %v1118_v5, 0.0 }
 0x1f2   : > { %v1230_v3 = vmax.f32 %v1228_v0, %v1229_v1 }
 0x1f3   : > { %v959_v6 = vpop.f32.mrf.mxu1 }
 0x1f4   : > { %v1231_v7 = vrot.slane %v1230_v3, 1  ;;  %v960_v8 = vadd.f32 %v2625_v40, %v959_v6 }
 0x1f5   : > { %v1119_v10 = vpop.f32.mrf.mxu2 }
 0x1f6   : > { %v1232_v11 = vmax.f32 %v1230_v3, %v1231_v7  ;;  %v1005_v13 = vmax.f32 %v960_v8, 0.0  ;;  %v1120_v14 = vadd.f32 %v2662_v28, %v1119_v10 }
 0x1f8   : > { %v1348_v16 = vsel %vm1347_vm2, %v1232_v11, %v1225_v2  ;;  %v1373_v17 = vpack.c.bf16 %v1232_v11, %v1232_v11  ;;  %v1192_v18 = vmax.f32 %v1120_v14, 0.0  ;;  %v1025_v24 = vpack.c.bf16 %v1005_v13, %v1004_v12 }
 0x1fa   : > { %v1425_v20 = vunpack.c.l.b16 %v1373_v17  ;;  %v1233_v21 = vmax.f32 %v1191_v15, %v1192_v18  ;;  %1161 = vmatmul.bf16.gmra.mxu2 %v1025_v24 }
 0x1fb   : > { %v962_v22 = vpop.f32.mrf.mxu1 }
 0x1fc   : > { %v1440_v23 = vsel %vm1347_vm2, %v1425_v20, %v1424_v19  ;;  %v1234_v25 = vrot.slane %v1233_v21, 4  ;;  %v963_v31 = vadd.f32 %v2625_v40, %v962_v22 }
 0x1fd   : > { %v1122_v26 = vpop.f32.mrf.mxu2 }
 0x1fe   : > { %v1235_v27 = vmax.f32 %v1233_v21, %v1234_v25  ;;  %v1123_v32 = vadd.f32 %v2662_v28, %v1122_v26  ;;  %v1006_v38 = vmax.f32 %v963_v31, 0.0 }
 0x200   : > { %v1236_v29 = vrot.slane %v1235_v27, 2  ;;  %v1193_v42 = vmax.f32 %v1123_v32, 0.0 }
 0x202   : > { %v1237_v30 = vmax.f32 %v1235_v27, %v1236_v29 }
 0x203   : > { %v964_v33 = vpop.f32.mrf.mxu1 }
 0x204   : > { %v1238_v34 = vrot.slane %v1237_v30, 1  ;;  %v965_v35 = vadd.f32 %v2625_v40, %v964_v33 }
 0x205   : > { %v1124_v36 = vpop.f32.mrf.mxu2 }
 0x206   : > { %v1239_v37 = vmax.f32 %v1237_v30, %v1238_v34  ;;  %v1007_v39 = vmax.f32 %v965_v35, 0.0  ;;  %v1125_v41 = vadd.f32 %v2662_v28, %v1124_v36 }
 0x208   : > { %v1350_v43 = vsel %vm1349_vm3, %v1239_v37, %v1348_v16  ;;  %v1374_v44 = vpack.c.bf16 %v1239_v37, %v1239_v37  ;;  %v1026_v45 = vpack.c.bf16 %v1007_v39, %v1006_v38  ;;  %v1194_v46 = vmax.f32 %v1125_v41, 0.0 }
 0x20a   : > { %v1426_v47 = vunpack.c.l.b16 %v1374_v44  ;;  %v1240_v48 = vmax.f32 %v1193_v42, %v1194_v46  ;;  %1166 = vmatmul.bf16.gmra.mxu2 %v1026_v45 }
 0x20c   : > { %v1441_v49 = vsel %vm1349_vm3, %v1426_v47, %v1440_v23  ;;  %v1241_v50 = vrot.slane %v1240_v48, 4 }
 0x20d   : > { %v1127_v51 = vpop.f32.mrf.mxu2 }
 0x20e   : > { %v1242_v52 = vmax.f32 %v1240_v48, %v1241_v50  ;;  %v1128_v56 = vadd.f32 %v2662_v28, %v1127_v51 }
 0x210   : > { %v1243_v53 = vrot.slane %v1242_v52, 2  ;;  %v1195_v61 = vmax.f32 %v1128_v56, 0.0 }
 0x211   : > { %v967_v54 = vpop.f32.mrf.mxu3 }
 0x212   : > { %v1244_v55 = vmax.f32 %v1242_v52, %v1243_v53  ;;  %v968_v0 = vadd.f32 %v2625_v40, %v967_v54 }
 0x214   : > { %v1245_v57 = vrot.slane %v1244_v55, 1  ;;  %v1008_v7 = vmax.f32 %v968_v0, 0.0 }
 0x215   : > { %v1129_v58 = vpop.f32.mrf.mxu2 }
 0x216   : > { %v1246_v59 = vmax.f32 %v1244_v55, %v1245_v57  ;;  %v1130_v60 = vadd.f32 %v2662_v28, %v1129_v58 }
 0x218   : > { %v2687_v62 = vsel %vm1351_vm4, %v1246_v59, %v1350_v43  ;;  %v1375_v63 = vpack.c.bf16 %v1246_v59, %v1246_v59  ;;  %v1196_v1 = vmax.f32 %v1130_v60, 0.0 }
 0x219   : > { %v969_v2 = vpop.f32.mrf.mxu3 }
 0x21a   : > { %v1427_v3 = vunpack.c.l.b16 %v1375_v63  ;;  %v1247_v4 = vmax.f32 %v1195_v61, %v1196_v1  ;;  %v970_v5 = vadd.f32 %v2625_v40, %v969_v2 }
 0x21c   : > { %v1442_v6 = vsel %vm1351_vm4, %v1427_v3, %v1441_v49  ;;  %v1248_v8 = vrot.slane %v1247_v4, 4  ;;  %v1009_v9 = vmax.f32 %v970_v5, 0.0 }
 0x21d   : > { %v1132_v10 = vpop.f32.mrf.mxu2 }
 0x21e   : > { %v1249_v11 = vmax.f32 %v1247_v4, %v1248_v8  ;;  %v1027_v12 = vpack.c.bf16 %v1009_v9, %v1008_v7  ;;  %v1133_v17 = vadd.f32 %v2662_v28, %v1132_v10 }
 0x220   : > { %v1250_v13 = vrot.slane %v1249_v11, 2  ;;  %1171 = vmatmul.bf16.vlgmr.msra.gmra.mxu3 %v1027_v12  ;;  %v1197_v21 = vmax.f32 %v1133_v17, 0.0 }
 0x221   : > { %v972_v14 = vpop.f32.mrf.mxu3 }
 0x222   : > { %v1251_v15 = vmax.f32 %v1249_v11, %v1250_v13  ;;  %v973_v22 = vadd.f32 %v2625_v40, %v972_v14 }
 0x224   : > { %v1252_v16 = vrot.slane %v1251_v15, 1  ;;  %v1010_v30 = vmax.f32 %v973_v22, 0.0 }
 0x225   : > { %v1134_v18 = vpop.f32.mrf.mxu2 }
 0x226   : > { %v2693_v24 = vmax.f32 %v1251_v15, %v1252_v16  ;;  %v1135_v19 = vadd.f32 %v2662_v28, %v1134_v18 }
 0x228   : > { %v1376_v20 = vpack.c.bf16 %v2693_v24, %v2693_v24  ;;  %v1198_v23 = vmax.f32 %v1135_v19, 0.0  ;;  %v1354_v15 = vsel %vm1353_vm5, %v2693_v24, %v2687_v62 }
 0x229   : > { %v974_v25 = vpop.f32.mrf.mxu3 }
 0x22a   : > { %v1428_v26 = vunpack.c.l.b16 %v1376_v20  ;;  %v1254_v27 = vmax.f32 %v1197_v21, %v1198_v23  ;;  %v975_v29 = vadd.f32 %v2625_v40, %v974_v25 }
 0x22c   : > { %v1255_v31 = vrot.slane %v1254_v27, 4  ;;  %v1011_v32 = vmax.f32 %v975_v29, 0.0  ;;  %v1443_v33 = vsel %vm1353_vm5, %v1428_v26, %v1442_v6 }
 0x22d   : > { %v1137_v34 = vpop.f32.mrf.mxu2 }
 0x22e   : > { %v1256_v35 = vmax.f32 %v1254_v27, %v1255_v31  ;;  %v1028_v36 = vpack.c.bf16 %v1011_v32, %v1010_v30  ;;  %v1138_v42 = vadd.f32 %v2662_v28, %v1137_v34  ;;  %v2142_v31 = vld [vmem:[%s2928_s7 + $0x38] sm:$0xff]  ;;  %v2141_v34 = vld [vmem:[%s2928_s7 + $0x30] sm:$0xff] }
 0x22f   : > { %1504 = vmatpush.bf16.msrb.mxu3 %v2142_v31 }
 0x230   : > { %v1257_v37 = vrot.slane %v1256_v35, 2  ;;  %1176 = vmatmul.bf16.gmra.mxu3 %v1028_v36  ;;  %v1199_v47 = vmax.f32 %v1138_v42, 0.0  ;;  %v2140_v36 = vld [vmem:[%s2928_s7 + $0x28] sm:$0xff] }
 0x231   : > { %v977_v38 = vpop.f32.mrf.mxu3 }
 0x232   : > { %v1258_v39 = vmax.f32 %v1256_v35, %v1257_v37  ;;  %v978_v48 = vadd.f32 %v2625_v40, %v977_v38 }
 0x233   : > { %1505 = vmatpush.bf16.msrb.mxu3 %v2141_v34 }
 0x234   : > { %v1259_v41 = vrot.slane %v1258_v39, 1  ;;  %v1012_v54 = vmax.f32 %v978_v48, 0.0 }
 0x235   : > { %v1139_v43 = vpop.f32.mrf.mxu2 }
 0x236   : > { %v1260_v44 = vmax.f32 %v1258_v39, %v1259_v41  ;;  %v1140_v45 = vadd.f32 %v2662_v28, %v1139_v43  ;;  %v2139_v39 = vld [vmem:[%s2928_s7 + $0x20] sm:$0xff] }
 0x237   : > { %1506 = vmatpush.bf16.msrb.mxu3 %v2140_v36 }
 0x238   : > { %v1377_v46 = vpack.c.bf16 %v1260_v44, %v1260_v44  ;;  %v1200_v49 = vmax.f32 %v1140_v45, 0.0  ;;  %v1356_v16 = vsel %vm1355_vm6, %v1260_v44, %v1354_v15 }
 0x239   : > { %v979_v50 = vpop.f32.mrf.mxu3 }
 0x23a   : > { %v1429_v51 = vunpack.c.l.b16 %v1377_v46  ;;  %v1261_v52 = vmax.f32 %v1199_v47, %v1200_v49  ;;  %v980_v53 = vadd.f32 %v2625_v40, %v979_v50 }
 0x23b   : > { %1507 = vmatpush.bf16.msrb.mxu3 %v2139_v39  ;;  %v2149_v39 = vld [vmem:[%s2904_s9 + $0x30] sm:$0xff] }
 0x23c   : > { %v1262_v55 = vrot.slane %v1261_v52, 4  ;;  %v1013_v56 = vmax.f32 %v980_v53, 0.0  ;;  %v1444_v57 = vsel %vm1355_vm6, %v1429_v51, %v1443_v33 }
 0x23d   : > { %v1142_v58 = vpop.f32.mrf.mxu2 }
 0x23e   : > { %v1263_v59 = vmax.f32 %v1261_v52, %v1262_v55  ;;  %v1029_v60 = vpack.c.bf16 %v1013_v56, %v1012_v54  ;;  %v1143_v1 = vadd.f32 %v2662_v28, %v1142_v58  ;;  %v2138_v52 = vld [vmem:[%s2928_s7 + $0x18] sm:$0xff] }
 0x23f   : > { %1508 = vmatpush.bf16.msrb.mxu3 %v2138_v52 }
 0x240   : > { %v1264_v61 = vrot.slane %v1263_v59, 2  ;;  %1181 = vmatmul.bf16.gmra.mxu3 %v1029_v60  ;;  %v1201_v5 = vmax.f32 %v1143_v1, 0.0 }
 0x242   : > { %v1265_v63 = vmax.f32 %v1263_v59, %v1264_v61 }
 0x244   : > { %v1266_v0 = vrot.slane %v1265_v63, 1 }
 0x245   : > { %v1144_v2 = vpop.f32.mrf.mxu2 }
 0x246   : > { %v1267_v3 = vmax.f32 %v1265_v63, %v1266_v0  ;;  %v1145_v40 = vadd.f32 %v2662_v28, %v1144_v2  ;;  %v2137_v2 = vld [vmem:[%s2928_s7 + $0x10] sm:$0xff] }
 0x247   : > { %1509 = vmatpush.bf16.msrb.mxu3 %v2137_v2 }
 0x248   : > { %v1378_v4 = vpack.c.bf16 %v1267_v3, %v1267_v3  ;;  %v1202_v6 = vmax.f32 %v1145_v40, 0.0  ;;  %v1358_v19 = vsel %vm1357_vm7, %v1267_v3, %v1356_v16 }
 0x24a   : > { %v1430_v7 = vunpack.c.l.b16 %v1378_v4  ;;  %v1268_v8 = vmax.f32 %v1201_v5, %v1202_v6 }
 0x24c   : > { %v1269_v9 = vrot.slane %v1268_v8, 4  ;;  %v1445_v10 = vsel %vm1357_vm7, %v1430_v7, %v1444_v57 }
 0x24d   : > { %v1147_v18 = vpop.f32.mrf.mxu2 }
 0x24e   : > { %v1270_v11 = vmax.f32 %v1268_v8, %v1269_v9  ;;  %v1148_v48 = vadd.f32 %v2662_v28, %v1147_v18 }
 0x250   : > { %v1271_v12 = vrot.slane %v1270_v11, 2  ;;  %v1203_v61 = vmax.f32 %v1148_v48, 0.0 }
 0x252   : > { %v1272_v13 = vmax.f32 %v1270_v11, %v1271_v12 }
 0x254   : > { %v1273_v14 = vrot.slane %v1272_v13, 1 }
 0x255   : > { %v1149_v62 = vpop.f32.mrf.mxu2 }
 0x256   : > { %v1274_v17 = vmax.f32 %v1272_v13, %v1273_v14  ;;  %v1150_v42 = vadd.f32 %v2662_v28, %v1149_v62  ;;  %v2136_v13 = vld [vmem:[%s2928_s7 + $0x8] sm:$0xff]  ;;  %v2135_v62 = vld [vmem:[%s2928_s7] sm:$0xff] }
 0x257   : > { %1510 = vmatpush.bf16.msrb.mxu3 %v2136_v13 }
 0x258   : > { %v1379_v20 = vpack.c.bf16 %v1274_v17, %v1274_v17  ;;  %v1360_v21 = vsel %vm1359_vm8, %v1274_v17, %v1358_v19  ;;  %v1204_v55 = vmax.f32 %v1150_v42, 0.0 }
 0x259   : > { %1370 = vst [vmem:[%s2721_s25] sm:$0xff] %v1360_v21 }
 0x25a   : > { %v1431_v22 = vunpack.c.l.b16 %v1379_v20  ;;  %v1275_v4 = vmax.f32 %v1203_v61, %v1204_v55  ;;  %v2147_v61 = vld [vmem:[%s2904_s9 + $0x20] sm:$0xff] }
 0x25b   : > { %1511 = vmatpush.bf16.msrb.mxu3 %v2135_v62 }
 0x25c   : > { %v2725_v23 = vsel %vm1359_vm8, %v1431_v22, %v1445_v10  ;;  %v1276_v15 = vrot.slane %v1275_v4, 4 }
 0x25d   : > { %v1152_v24 = vpop.f32.mrf.mxu2 }
 0x25e   : > { %v1153_v43 = vadd.f32 %v2662_v28, %v1152_v24 }
 0x260   : > { %v1205_v56 = vmax.f32 %v1153_v43, 0.0 }
 0x265   : > { %v1154_v25 = vpop.f32.mrf.mxu2 }
 0x266   : > { %v1155_v37 = vadd.f32 %v2662_v28, %v1154_v25  ;;  %v1277_v25 = vmax.f32 %v1275_v4, %v1276_v15 }
 0x268   : > { %v1206_v49 = vmax.f32 %v1155_v37, 0.0  ;;  %v1278_v36 = vrot.slane %v1277_v25, 2 }
 0x26a   : > { %v1282_v63 = vmax.f32 %v1205_v56, %v1206_v49 }
 0x26c   : > { %v1283_v10 = vrot.slane %v1282_v63, 4 }
 0x26d   : > { %v1157_v26 = vpop.f32.mrf.mxu2 }
 0x26e   : > { %v1158_v45 = vadd.f32 %v2662_v28, %v1157_v26  ;;  %v1284_v20 = vmax.f32 %v1282_v63, %v1283_v10 }
 0x270   : > { %v1207_v59 = vmax.f32 %v1158_v45, 0.0  ;;  %v1285_v31 = vrot.slane %v1284_v20, 2  ;;  %v1279_v45 = vmax.f32 %v1277_v25, %v1278_v36 }
 0x272   : > { %v1280_v56 = vrot.slane %v1279_v45, 1 }
 0x275   : > { %v1159_v27 = vpop.f32.mrf.mxu2 }
 0x276   : > { %v1160_v41 = vadd.f32 %v2662_v28, %v1159_v27 }
 0x278   : > { %v1208_v53 = vmax.f32 %v1160_v41, 0.0  ;;  %v1286_v41 = vmax.f32 %v1284_v20, %v1285_v31 }
 0x27a   : > { %v1289_v3 = vmax.f32 %v1207_v59, %v1208_v53 }
 0x27c   : > { %v1290_v14 = vrot.slane %v1289_v3, 4 }
 0x27d   : > { %v1162_v29 = vpop.f32.mrf.mxu2 }
 0x27e   : > { %v1163_v50 = vadd.f32 %v2662_v28, %v1162_v29  ;;  %v1291_v24 = vmax.f32 %v1289_v3, %v1290_v14 }
 0x280   : > { %v1209_v0 = vmax.f32 %v1163_v50, 0.0  ;;  %v2148_v50 = vld [vmem:[%s2904_s9 + $0x28] sm:$0xff] }
 0x285   : > { %v1164_v30 = vpop.f32.mrf.mxu2 }
 0x286   : > { %v1165_v44 = vadd.f32 %v2662_v28, %v1164_v30 }
 0x288   : > { %v1210_v57 = vmax.f32 %v1165_v44, 0.0 }
 0x28a   : > { %v1296_v5 = vmax.f32 %v1209_v0, %v1210_v57 }
 0x28c   : > { %v1297_v16 = vrot.slane %v1296_v5, 4 }
 0x28d   : > { %v1167_v33 = vpop.f32.mrf.mxu2 }
 0x28e   : > { %v1168_v54 = vadd.f32 %v2662_v28, %v1167_v33  ;;  %v1298_v26 = vmax.f32 %v1296_v5, %v1297_v16  ;;  %v1292_v33 = vrot.slane %v1291_v24, 2 }
 0x290   : > { %v1211_v40 = vmax.f32 %v1168_v54, 0.0  ;;  %v1299_v37 = vrot.slane %v1298_v26, 2  ;;  %v1293_v43 = vmax.f32 %v1291_v24, %v1292_v33 }
 0x292   : > { %v1294_v54 = vrot.slane %v1293_v43, 1 }
 0x294   : > { %v1295_v2 = vmax.f32 %v1293_v43, %v1294_v54  ;;  %v2242_v54 = vld [vmem:[%s2903_s8] ss:$0 sm:$0xff] }
 0x295   : > { %v1169_v38 = vpop.f32.mrf.mxu2 }
 0x296   : > { %v1170_v46 = vadd.f32 %v2662_v28, %v1169_v38 }
 0x298   : > { %v1212_v60 = vmax.f32 %v1170_v46, 0.0  ;;  %v1300_v46 = vmax.f32 %v1298_v26, %v1299_v37 }
 0x29a   : > { %v1303_v8 = vmax.f32 %v1211_v40, %v1212_v60  ;;  %v1301_v57 = vrot.slane %v1300_v46, 1  ;;  %v1281_v40 = vmax.f32 %v1279_v45, %v1280_v56 }
 0x29c   : > { %v1304_v19 = vrot.slane %v1303_v8, 4  ;;  %v1302_v4 = vmax.f32 %v1300_v46, %v1301_v57  ;;  %v2146_v46 = vld [vmem:[%s2904_s9 + $0x18] sm:$0xff] }
 0x29e   : > { %v1305_v29 = vmax.f32 %v1303_v8, %v1304_v19 }
 0x2a0   : > { %v1306_v38 = vrot.slane %v1305_v29, 2 }
 0x2a2   : > { %v1307_v48 = vmax.f32 %v1305_v29, %v1306_v38 }
 0x2a3   : > { %v1172_v32 = vpop.f32.mrf.mxu3 }
 0x2a4   : > { %v1173_v58 = vadd.f32 %v2662_v28, %v1172_v32  ;;  %v1308_v60 = vrot.slane %v1307_v48, 1 }
 0x2a6   : > { %v1213_v6 = vmax.f32 %v1173_v58, 0.0  ;;  %v1309_v5 = vmax.f32 %v1307_v48, %v1308_v60  ;;  %v2144_v48 = vld [vmem:[%s2904_s9 + $0x8] sm:$0xff] }
 0x2a8   : > { %v1384_v14 = vpack.c.bf16 %v1309_v5, %v1309_v5 }
 0x2ab   : > { %v1174_v35 = vpop.f32.mrf.mxu3 }
 0x2ac   : > { %v1175_v51 = vadd.f32 %v2662_v28, %v1174_v35  ;;  %v2150_v35 = vld [vmem:[%s2904_s9 + $0x38] sm:$0xff] }
 0x2ad   : > { %1589 = vmatpush.bf16.msra.mxu3 %v2150_v35 }
 0x2ae   : > { %v1214_v1 = vmax.f32 %v1175_v51, 0.0  ;;  %v1287_v51 = vrot.slane %v1286_v41, 1 }
 0x2b0   : > { %v1310_v11 = vmax.f32 %v1213_v6, %v1214_v1  ;;  %v1288_v63 = vmax.f32 %v1286_v41, %v1287_v51  ;;  %v2156_v51 = vld [vmem:[%s2906_s11 + $0x28] sm:$0xff] }
 0x2b1   : > { %1590 = vmatpush.bf16.msra.mxu3 %v2149_v39 }
 0x2b2   : > { %v1311_v21 = vrot.slane %v1310_v11, 4  ;;  %v1381_v6 = vpack.c.bf16 %v1288_v63, %v1288_v63  ;;  %v1361_v15 = vsel %vm1347_vm2, %v1288_v63, %v1281_v40  ;;  %v2153_v63 = vld [vmem:[%s2906_s11 + $0x10] sm:$0xff] }
 0x2b3   : > { %v1177_v47 = vpop.f32.mrf.mxu3  ;;  %v1362_v19 = vsel %vm1349_vm3, %v1295_v2, %v1361_v15 }
 0x2b4   : > { %v1178_v7 = vadd.f32 %v2662_v28, %v1177_v47  ;;  %v1312_v32 = vmax.f32 %v1310_v11, %v1311_v21  ;;  %v1380_v11 = vpack.c.bf16 %v1281_v40, %v1281_v40  ;;  %v1433_v16 = vunpack.c.l.b16 %v1381_v6 }
 0x2b5   : > { %1591 = vmatpush.bf16.msra.mxu3 %v2148_v50  ;;  %v1363_v62 = vsel %vm1351_vm4, %v1302_v4, %v1362_v19  ;;  %v2157_v50 = vld [vmem:[%s2906_s11 + $0x30] sm:$0xff] }
 0x2b6   : > { %v1215_v17 = vmax.f32 %v1178_v7, 0.0  ;;  %v1313_v42 = vrot.slane %v1312_v32, 2  ;;  %v1364_v26 = vsel %vm1353_vm5, %v1309_v5, %v1363_v62 }
 0x2b8   : > { %v1314_v52 = vmax.f32 %v1312_v32, %v1313_v42 }
 0x2b9   : > { %1592 = vmatpush.bf16.msra.mxu3 %v2147_v61  ;;  %v2154_v61 = vld [vmem:[%s2906_s11 + $0x18] sm:$0xff] }
 0x2ba   : > { %v1315_v0 = vrot.slane %v1314_v52, 1 }
 0x2bb   : > { %v1179_v9 = vpop.f32.mrf.mxu3 }
 0x2bc   : > { %v1180_v12 = vadd.f32 %v2662_v28, %v1179_v9  ;;  %v1316_v7 = vmax.f32 %v1314_v52, %v1315_v0  ;;  %v1382_v9 = vpack.c.bf16 %v1295_v2, %v1295_v2  ;;  %v2155_v52 = vld [vmem:[%s2906_s11 + $0x20] sm:$0xff]  ;;  %v2152_v0 = vld [vmem:[%s2906_s11 + $0x8] sm:$0xff] }
 0x2bd   : > { %1593 = vmatpush.bf16.msra.mxu3 %v2146_v46 }
 0x2be   : > { %v1216_v18 = vmax.f32 %v1180_v12, 0.0  ;;  %v1383_v12 = vpack.c.bf16 %v1302_v4, %v1302_v4  ;;  %v1434_v20 = vunpack.c.l.b16 %v1382_v9 }
 0x2c0   : > { %v1317_v22 = vmax.f32 %v1215_v17, %v1216_v18  ;;  %v1385_v17 = vpack.c.bf16 %v1316_v7, %v1316_v7  ;;  %v1435_v24 = vunpack.c.l.b16 %v1383_v12 }
 0x2c2   : > { %v1318_v27 = vrot.slane %v1317_v22, 4  ;;  %v1437_v31 = vunpack.c.l.b16 %v1385_v17 }
 0x2c3   : > { %v1182_v30 = vpop.f32.mrf.mxu3 }
 0x2c4   : > { %v1319_v34 = vmax.f32 %v1317_v22, %v1318_v27  ;;  %v1183_v47 = vadd.f32 %v2662_v28, %v1182_v30  ;;  %v1432_v22 = vunpack.c.l.b16 %v1380_v11  ;;  %v1436_v27 = vunpack.c.l.b16 %v1384_v14 }
 0x2c5   : > { %v1365_v30 = vsel %vm1355_vm6, %v1316_v7, %v1364_v26 }
 0x2c6   : > { %v1320_v44 = vrot.slane %v1319_v34, 2  ;;  %v1217_v58 = vmax.f32 %v1183_v47, 0.0  ;;  %v1447_v29 = vsel %vm1347_vm2, %v1433_v16, %v1432_v22  ;;  %v2145_v47 = vld [vmem:[%s2904_s9 + $0x10] sm:$0xff] }
 0x2c7   : > { %v1448_v33 = vsel %vm1349_vm3, %v1434_v20, %v1447_v29  ;;  %1594 = vmatpush.bf16.msra.mxu3 %v2145_v47 }
 0x2c8   : > { %v1321_v55 = vmax.f32 %v1319_v34, %v1320_v44  ;;  %v1449_v36 = vsel %vm1351_vm4, %v1435_v24, %v1448_v33 }
 0x2c9   : > { %v1450_v39 = vsel %vm1353_vm5, %v1436_v27, %v1449_v36 }
 0x2ca   : > { %v1322_v3 = vrot.slane %v1321_v55, 1  ;;  %v1451_v42 = vsel %vm1355_vm6, %v1437_v31, %v1450_v39 }
 0x2cb   : > { %v1184_v49 = vpop.f32.mrf.mxu3  ;;  %1595 = vmatpush.bf16.msra.mxu3 %v2144_v48 }
 0x2cc   : > { %v1185_v53 = vadd.f32 %v2662_v28, %v1184_v49  ;;  %v1323_v10 = vmax.f32 %v1321_v55, %v1322_v3  ;;  %v2158_v49 = vld [vmem:[%s2906_s11 + $0x38] sm:$0xff]  ;;  %v2243_v3 = vld [vmem:[%s2905_s10] ss:$0 sm:$0xff] }
 0x2ce   : > { %v1218_v59 = vmax.f32 %v1185_v53, 0.0  ;;  %v1386_v21 = vpack.c.bf16 %v1323_v10, %v1323_v10  ;;  %v1366_v34 = vsel %vm1357_vm7, %v1323_v10, %v1365_v30 }
 0x2d0   : > { %v1324_v1 = vmax.f32 %v1217_v58, %v1218_v59  ;;  %v1438_v35 = vunpack.c.l.b16 %v1386_v21 }
 0x2d2   : > { %v1325_v28 = vrot.slane %v1324_v1, 4  ;;  %v1452_v43 = vsel %vm1357_vm7, %v1438_v35, %v1451_v42 }
 0x2d4   : > { %v1326_v8 = vmax.f32 %v1324_v1, %v1325_v28  ;;  %v2151_v1 = vld [vmem:[%s2906_s11] sm:$0xff] }
 0x2d6   : > { %v1327_v13 = vrot.slane %v1326_v8, 2 }
 0x2d8   : > { %v1328_v18 = vmax.f32 %v1326_v8, %v1327_v13 }
 0x2da   : > { %v1329_v25 = vrot.slane %v1328_v18, 1 }
 0x2dc   : > { %v1330_v32 = vmax.f32 %v1328_v18, %v1329_v25 }
 0x2de   : > { %v1387_v37 = vpack.c.bf16 %v1330_v32, %v1330_v32  ;;  %v1367_v38 = vsel %vm1359_vm8, %v1330_v32, %v1366_v34 }
 0x2df   : > { %1371 = vst [vmem:[%s2721_s25 + $0x8] sm:$0xff] %v1367_v38  ;;  %s2295_s25 = scalar_lea.hbm %s2908_s13, 32 }
 0x2e0   : > { %v1439_v41 = vunpack.c.l.b16 %v1387_v37  ;;  %p2297_p4 = scmp.lt.s32.totalorder %s2295_s25, %s2291_s2 }
 0x2e2   : > { %v1453_v44 = vsel %vm1359_vm8, %v1439_v41, %v1452_v43  ;;  %p2298_p7 = por %p2297_p4, %p2296_p3 }
 0x2e3   : > { %v1454_v45 = vpack.c.b16 %v1453_v44, %v2725_v23  ;;  %v2143_v23 = vld [vmem:[%s2904_s9] sm:$0xff] }
 0x2e4   : > { %1596 = vmatpush.bf16.msra.mxu3 %v2143_v23  ;;  %p2299_p8 = pnand %p2298_p7, %p2294_p2 }
 0x2e5   : > { %1512 = vmatmul.bf16.vlgmr.msrb.gmra.mxu3 %v1454_v45 }
 0x2e8   : > { %1674 = vmatpush.bf16.msrb.mxu3 %v2158_v49 }
 0x2ec   : > { %1675 = vmatpush.bf16.msrb.mxu3 %v2157_v50 }
 0x2f0   : > { %1676 = vmatpush.bf16.msrb.mxu3 %v2156_v51 }
 0x2f4   : > { %1677 = vmatpush.bf16.msrb.mxu3 %v2155_v52 }
 0x2f8   : > { %1678 = vmatpush.bf16.msrb.mxu3 %v2154_v61 }
 0x2fc   : > { %1679 = vmatpush.bf16.msrb.mxu3 %v2153_v63 }
 0x300   : > { %1680 = vmatpush.bf16.msrb.mxu3 %v2152_v0 }
 0x304   : > { %1681 = vmatpush.bf16.msrb.mxu3 %v2151_v1 }
 0x368   : > { %v1513_v53 = vpop.f32.mrf.mxu3 }
 0x369   : > { %v1514_v55 = vadd.f32 %v2242_v54, %v1513_v53 }
 0x36b   : > { %v1518_v58 = vmax.f32 %v1514_v55, 0.0 }
 0x370   : > { %v1515_v56 = vpop.f32.mrf.mxu3 }
 0x371   : > { %v1516_v57 = vadd.f32 %v2242_v54, %v1515_v56 }
 0x373   : > { %v1519_v59 = vmax.f32 %v1516_v57, 0.0 }
 0x375   : > { %v1520_v60 = vpack.c.bf16 %v1519_v59, %v1518_v58 }
 0x377   : > { %1597 = vmatmul.bf16.vlgmr.msra.gmra.mxu3 %v1520_v60 }
 0x3fa   : > { %v1598_v2 = vpop.f32.mrf.mxu3 }
 0x3fb   : > { %v1599_v40 = vadd.f32 %v2243_v3, %v1598_v2 }
 0x3fd   : > { %v1603_v5 = vmax.f32 %v1599_v40, 0.0 }
 0x402   : > { %v1600_v4 = vpop.f32.mrf.mxu3 }
 0x403   : > { %v1601_v28 = vadd.f32 %v2243_v3, %v1600_v4 }
 0x405   : > { %v1604_v6 = vmax.f32 %v1601_v28, 0.0 }
 0x407   : > { %v1605_v7 = vpack.c.bf16 %v1604_v6, %v1603_v5 }
 0x409   : > { %1682 = vmatmul.bf16.vlgmr.msrb.gmra.mxu3 %v1605_v7 }
 0x40a   : > { %2302 = shalt.err (!%p2299_p8)
}
 0x40b   : > { %s2378_s27 = smov 128   ;;  %s2379_s0 = smov 8   ;;  %v2244_v8 = vld [vmem:[%s2907_s12] ss:$0 sm:$0xff] }
 0x40c   : > { %2184 = dma.vmem_to_hbm [thread:$0]  (%p2493_p5), %s1709_s4, 256, %s1711_s20, %s1691_s26, %s2378_s27, %s2378_s27, %s2379_s0  }
 0x40d   : > { %s2929_s6 = sshll.u32 %s2710_s18, 4  ;;  %s1724_s25 = scalar_lea.hbm %s2909_s14, %s2159_s21 }
 0x40e   : > { %s489_s1 = scalar_lea.vmem [#allocation6], %s2929_s6  ;;  %s1727_s7 = sshll.u32 %s1724_s25, 4  ;;  %s1728_s7 = int_to_ptr.hbm [resolvable:$true] %s1727_s7 }
 0x40f   : > { %s1725_s17 = sshll.u32 %s489_s1, 4  ;;  %s1696_s4 = scalar_lea.sflag [#allocation7], %s2710_s18  ;;  %s1726_s17 = int_to_ptr.vmem [resolvable:$true] %s1725_s17 }
 0x410   : > { %s2317_s20 = sshra.s32 %s1728_s7, 4  ;;  %s2323_s6 = scalar_lea.hbm %s2909_s14, 32  ;;  %s2318_s20 = int_to_ptr.hbm [resolvable:$true] %s2317_s20 }
 0x411   : > { %s2319_s26 = scalar_lea.hbm %s2318_s20, 16  ;;  %p2324_p12 = scmp.lt.s32.totalorder %s2318_s20, %s2909_s14 }
 0x412   : > { %p2320_p9 = scmp.ne.s32.totalorder %s2318_s20, %s2319_s26  ;;  %p2325_p13 = scmp.lt.s32.totalorder %s2323_s6, %s2319_s26 }
 0x414   : > { %p2321_p10 = pnand %p2320_p9, %p2493_p5  ;;  %p2326_p0 = por %p2325_p13, %p2324_p12 }
 0x416   : > { %p2322_p11 = pneg %p2321_p10 }
 0x418   : > { %p2327_p1 = pnand %p2326_p0, %p2322_p11 }
 0x48c   : > { %v1683_v9 = vpop.f32.mrf.mxu3 }
 0x48d   : > { %v1684_v10 = vadd.f32 %v2244_v8, %v1683_v9 }
 0x48f   : > { %1688 = vst [vmem:[%s489_s1] sm:$0xff] %v1684_v10 }
 0x494   : > { %v1685_v11 = vpop.f32.mrf.mxu3 }
 0x495   : > { %v1686_v12 = vadd.f32 %v2244_v8, %v1685_v11 }
 0x497   : > { %1689 = vst [vmem:[%s489_s1 + $0x8] sm:$0xff] %v1686_v12 }
 0x498   : > { %2330 = shalt.err (!%p2327_p1)
}
 0x499   : > { %2185 = dma.vmem_to_hbm [thread:$0]  (%p2493_p5), %s1726_s17, 256, %s1728_s7, %s1696_s4, %s2378_s27, %s2378_s27, %s2379_s0  }
 0x49a PF: > { %p2201_p2 = scmp.ge.s32.totalorder %s2373_s16, 2  ;;  %s1742_s18 = sand.u32 1, %s2361_s29  }
 0x49b   : > { %s1743_s1 = scalar_lea.sflag [#allocation4], %s1742_s18 }
 0x49c   : > { %p2193_p3 = pnand %p2201_p2, %p2497_p6 }
 0x49e   : > { %p2194_p4 = pneg %p2193_p3 }
 0x4a0   : > { %2352 = dma.done.wait (%p2194_p4), %s1743_s1, 256  }
 0x4a1   : > { %2354 = vsyncadd (%p2194_p4), %s1743_s1, 4294967040  ;;  %s1753_s3 = scalar_lea.sflag [#allocation7], %s1742_s18 }
 0x4a2   : > { %2356 = dma.done.wait (%p2194_p4), %s1753_s3, 256  }
 0x4a3   : > { %2358 = vsyncadd (%p2194_p4), %s1753_s3, 4294967040  ;;  %p29_p5 = scmp.ge.s32.totalorder %s2480_s19, 4   ;;  %s2930_s29 = smov %s2365_s30 }
 0x4a4   : > { %s2931_s30 = smov %s2369_s15  ;;  %s2932_s15 = smov %s2491_s22 }
 0x4a5   : > { %s2933_s16 = smov %s2480_s19  ;;  %31 = sbr.rel (!%p29_p5) target bundleno = 15 (0xf), region = 129 }
 0x4aa   :  { %1759 = vsyncpa [#allocation3], 1 }
 0x4ab   :  { %1761 = vsyncpa [#allocation3 + $0x1], 1 }
 0x4ac   :  { %1762 = vsyncpa [#allocation4], 1 }
 0x4ad   :  { %1764 = vsyncpa [#allocation4 + $0x1], 1 }
 0x4ae   :  { %1765 = vsyncpa [#allocation7], 1 }
 0x4af   :  { %1767 = vsyncpa [#allocation7 + $0x1], 1 }

</bundles_post_ra>
